<compile_context>
chip_gen: v7x
topology: tpu7x:2x2x1
jax: 0.10.0
libtpu: 0.0.40
codegen_flags: <defaults>
</compile_context>

<pallas_src>
import numpy as np

import jax
import jax.numpy as jnp
from jax.experimental import pallas as pl
from jax.experimental.pallas import tpu as pltpu


# ---------------------------------------------------------------------------
# Row offsets inside the two packed parameter slabs
# ---------------------------------------------------------------------------
_T1_ROWS = 32            # per conv1 tap-row block (28 rows used, padded to 32)
_T2_OFF = 160            # conv2 blocks start here, 72 rows each
_T2_ROWS = 72
_B1_ROW = 520
_B2_ROW = 521
_CONV_SLAB_ROWS = 528

_WFC1_OFF = 0            # (192, 128)
_BFC1_ROW = 192
_WFC2_OFF = 200          # (128, 128)
_BFC2_ROW = 328
_WOUT_OFF = 336          # (128, 128)
_BOUT_ROW = 464
_FC_SLAB_ROWS = 472


# ---------------------------------------------------------------------------
# Fused forward kernel
# ---------------------------------------------------------------------------
def _lenet_kernel(xslab_ref, conv_ref, fc_ref, o_ref):
    f32 = jnp.float32
    nb = xslab_ref.shape[0] // 6      # N * 12  (one row per pooled output row)
    n = nb // 12                      # batch

    # ---- conv1 + bias + ReLU + 2x2 maxpool ---------------------------------
    # xslab rows: k*(N*12) + n*12 + a  ->  x[n, 2a + k, :], k = dh + i.
    # conv1 Toeplitz block i maps 28 input cols -> lanes pw*128 + oc*12 + b,
    # i.e. pre-pool output column w_out = 2b + pw, channel oc.
    acc1 = jnp.dot(xslab_ref[0:2 * nb, :], conv_ref[0:28, :],
                   preferred_element_type=f32)
    for i in range(1, 5):
        acc1 = acc1 + jnp.dot(
            xslab_ref[i * nb:(i + 2) * nb, :],
            conv_ref[i * _T1_ROWS:i * _T1_ROWS + 28, :],
            preferred_element_type=f32)
    y1 = jnp.maximum(acc1 + conv_ref[_B1_ROW:_B1_ROW + 1, :], 0.0)  # (2nb,256)
    # pool over W: even columns live in lanes [0,72), odd in [128,200)
    wp1 = jnp.maximum(y1[:, 0:72], y1[:, 128:200])                  # (2nb, 72)
    # pool over H: even rows in block [0,nb), odd rows in [nb,2nb)
    p1 = jnp.maximum(wp1[0:nb, :], wp1[nb:2 * nb, :])               # (nb, 72)
    # p1[n*12 + a, ic*12 + b] = maxpool(relu(conv1(x)))[n, ic, a, b]

    # ---- conv2 + bias + ReLU + 2x2 maxpool + flatten (per sample) ----------
    b2row = conv_ref[_B2_ROW:_B2_ROW + 1, :]
    feats = []
    for s in range(n):
        base = s * 12
        acc2 = jnp.dot(p1[base:base + 8, :],
                       conv_ref[_T2_OFF:_T2_OFF + _T2_ROWS, :],
                       preferred_element_type=f32)
        for i in range(1, 5):
            acc2 = acc2 + jnp.dot(
                p1[base + i:base + i + 8, :],
                conv_ref[_T2_OFF + i * _T2_ROWS:_T2_OFF + (i + 1) * _T2_ROWS, :],
                preferred_element_type=f32)
        y2 = jnp.maximum(acc2 + b2row, 0.0)                 # (8, 256)
        # pool over W: even output cols in lanes [0,48), odd in [128,176)
        wp2 = jnp.maximum(y2[:, 0:48], y2[:, 128:176])      # (8, 48)
        # pool over H + flatten: feature lane = u*48 + v*12 + oc2
        rows = [jnp.maximum(wp2[2 * u:2 * u + 1, :], wp2[2 * u + 1:2 * u + 2, :])
                for u in range(4)]
        feats.append(jnp.concatenate(rows, axis=1))          # (1, 192)
    fc1_in = jnp.concatenate(feats, axis=0)                  # (n, 192)

    # ---- fc1 -> relu -> fc2 -> relu -> out (single lane-padded dots) -------
    z1 = jnp.maximum(
        jnp.dot(fc1_in, fc_ref[_WFC1_OFF:_WFC1_OFF + 192, :],
                preferred_element_type=f32)
        + fc_ref[_BFC1_ROW:_BFC1_ROW + 1, :], 0.0)           # (n, 128)
    z2 = jnp.maximum(
        jnp.dot(z1, fc_ref[_WFC2_OFF:_WFC2_OFF + 128, :],
                preferred_element_type=f32)
        + fc_ref[_BFC2_ROW:_BFC2_ROW + 1, :], 0.0)           # (n, 128)
    o_ref[...] = (jnp.dot(z2, fc_ref[_WOUT_OFF:_WOUT_OFF + 128, :],
                          preferred_element_type=f32)
                  + fc_ref[_BOUT_ROW:_BOUT_ROW + 1, :])      # (n, 128)


# ---------------------------------------------------------------------------
# One-time host-side repack of PyTorch-layout parameters into 2 slabs
# ---------------------------------------------------------------------------
def prepare_params(p):
    f32 = np.float32
    w1 = np.asarray(p["w1"], f32)      # (6, 1, 5, 5)
    b1 = np.asarray(p["b1"], f32)      # (6,)
    w2 = np.asarray(p["w2"], f32)      # (12, 6, 5, 5)
    b2 = np.asarray(p["b2"], f32)      # (12,)
    wfc1 = np.asarray(p["wfc1"], f32)  # (120, 192); input idx = c*16 + h*4 + w
    bfc1 = np.asarray(p["bfc1"], f32)
    wfc2 = np.asarray(p["wfc2"], f32)  # (60, 120)
    bfc2 = np.asarray(p["bfc2"], f32)
    wout = np.asarray(p["wout"], f32)  # (10, 60)
    bout = np.asarray(p["bout"], f32)

    # conv1 banded-Toeplitz blocks (one per kernel row i): 28 input cols ->
    # lane pw*128 + oc*12 + b for pre-pool output column w_out = 2b + pw.
    t1 = np.zeros((5, _T1_ROWS, 256), f32)
    b1row = np.zeros((1, 256), f32)
    for oc in range(6):
        for b in range(12):
            for pw in range(2):
                lane = pw * 128 + oc * 12 + b
                w_out = 2 * b + pw
                b1row[0, lane] = b1[oc]
                for i in range(5):
                    for j in range(5):
                        t1[i, w_out + j, lane] = w1[oc, 0, i, j]

    # conv2 blocks: row = ic*12 + w (pooled layer-1 column), lane =
    # dw*128 + v*12 + oc2 for pre-pool output column ow = 2v + dw.
    t2 = np.zeros((5, _T2_ROWS, 256), f32)
    b2row = np.zeros((1, 256), f32)
    for oc2 in range(12):
        for v in range(4):
            for dw in range(2):
                lane = dw * 128 + v * 12 + oc2
                ow = 2 * v + dw
                b2row[0, lane] = b2[oc2]
                for ic in range(6):
                    for i in range(5):
                        for j in range(5):
                            t2[i, ic * 12 + ow + j, lane] = w2[oc2, ic, i, j]

    conv_slab = np.zeros((_CONV_SLAB_ROWS, 256), f32)
    conv_slab[0:160] = t1.reshape(160, 256)
    conv_slab[_T2_OFF:_T2_OFF + 360] = t2.reshape(360, 256)
    conv_slab[_B1_ROW:_B1_ROW + 1] = b1row
    conv_slab[_B2_ROW:_B2_ROW + 1] = b2row

    # fc slab, all output dims zero-padded to 128 lanes.
    # fc1 rows follow the kernel's feature layout f = u*48 + v*12 + c, which
    # corresponds to PyTorch's NCHW flatten index c*16 + u*4 + v.
    fc_slab = np.zeros((_FC_SLAB_ROWS, 128), f32)
    wfc1_r = wfc1.reshape(120, 12, 4, 4).transpose(2, 3, 1, 0).reshape(192, 120)
    fc_slab[_WFC1_OFF:_WFC1_OFF + 192, 0:120] = wfc1_r
    fc_slab[_BFC1_ROW, 0:120] = bfc1
    fc_slab[_WFC2_OFF:_WFC2_OFF + 120, 0:60] = wfc2.T
    fc_slab[_BFC2_ROW, 0:60] = bfc2
    fc_slab[_WOUT_OFF:_WOUT_OFF + 60, 0:10] = wout.T
    fc_slab[_BOUT_ROW, 0:10] = bout

    return jnp.asarray(conv_slab), jnp.asarray(fc_slab)


@jax.jit
def network_forward(x_nchw, conv_slab, fc_slab):
    N = x_nchw.shape[0]
    x2d = x_nchw.astype(jnp.float32).reshape(N, 28, 28)      # C == 1
    # Pool-parity space-to-depth over rows (pure layout plumbing in XLA):
    # xslab row k*(N*12) + n*12 + a  <-  x[n, 2a + k, :],  k = 0..5.
    xslab = jnp.concatenate(
        [x2d[:, k:k + 24:2, :].reshape(N * 12, 28) for k in range(6)], axis=0)

    vmem = pl.BlockSpec(memory_space=pltpu.MemorySpace.VMEM)
    out = pl.pallas_call(
        _lenet_kernel,
        out_shape=jax.ShapeDtypeStruct((N, 128), jnp.float32),
        in_specs=[vmem, vmem, vmem],
        out_specs=vmem,
        # Grid-less single invocation: everything (<1 MiB) is VMEM resident.
        # For serving batches, add a leading batch-tile grid axis marked
        # "parallel" (size blocks against 64 MiB VMEM on v7x).
    )(xslab, conv_slab, fc_slab)
    return out[:, :10]


# ---------------------------------------------------------------------------
# Pure-JAX reference (no Pallas) for a numerical sanity check
# ---------------------------------------------------------------------------
def reference_forward(x, p):
    def conv(x, w, b):
        y = jax.lax.conv_general_dilated(
            x, w, (1, 1), "VALID", dimension_numbers=("NCHW", "OIHW", "NCHW"))
        return y + b.reshape(1, -1, 1, 1)

    def pool(x):
        return jax.lax.reduce_window(
            x, -jnp.inf, jax.lax.max, (1, 1, 2, 2), (1, 1, 2, 2), "VALID")

    x = pool(jax.nn.relu(conv(x, p["w1"], p["b1"])))
    x = pool(jax.nn.relu(conv(x, p["w2"], p["b2"])))
    x = x.reshape(-1, 12 * 4 * 4)
    x = jax.nn.relu(x @ p["wfc1"].T + p["bfc1"])
    x = jax.nn.relu(x @ p["wfc2"].T + p["bfc2"])
    return x @ p["wout"].T + p["bout"]


if __name__ == "__main__":
    key = jax.random.PRNGKey(0)
    keys = jax.random.split(key, 11)

    def uni(k, shape, fan_in):
        bound = 1.0 / np.sqrt(fan_in)
        return jax.random.uniform(k, shape, jnp.float32, -bound, bound)

    params = {
        "w1": uni(keys[0], (6, 1, 5, 5), 1 * 5 * 5),
        "b1": uni(keys[1], (6,), 1 * 5 * 5),
        "w2": uni(keys[2], (12, 6, 5, 5), 6 * 5 * 5),
        "b2": uni(keys[3], (12,), 6 * 5 * 5),
        "wfc1": uni(keys[4], (120, 192), 192),
        "bfc1": uni(keys[5], (120,), 192),
        "wfc2": uni(keys[6], (60, 120), 120),
        "bfc2": uni(keys[7], (60,), 120),
        "wout": uni(keys[8], (10, 60), 60),
        "bout": uni(keys[9], (10,), 60),
    }

    # Network geometry requires 28x28 single-channel input (like MNIST).
    x = jax.random.normal(keys[10], (2, 1, 28, 28), jnp.float32)

    conv_slab, fc_slab = prepare_params(params)   # one-time host-side repack
    y = jax.block_until_ready(network_forward(x, conv_slab, fc_slab))
    assert y.shape == (2, 10) and y.dtype == jnp.float32

    y_ref = jax.block_until_ready(reference_forward(x, params))
    np.testing.assert_allclose(np.asarray(y), np.asarray(y_ref),
                               rtol=1e-4, atol=1e-4)
    print("KERNEL_OK")
</pallas_src>

<mosaic_0001>
module attributes {stable_mosaic.version = 11 : i64} {
  func.func @_lenet_kernel(%arg0: memref<144x28xf32, #tpu.memory_space<vmem>>, %arg1: memref<528x256xf32, #tpu.memory_space<vmem>>, %arg2: memref<472x128xf32, #tpu.memory_space<vmem>>, %arg3: memref<2x128xf32, #tpu.memory_space<vmem>>) attributes {dimension_semantics = [], scalar_prefetch = 0 : i64, scratch_operands = 0 : i64, tpu.core_type = #tpu.core_type<tc>} {
    %c0 = arith.constant 0 : index
    %c0_0 = arith.constant 0 : index
    %0 = vector.load %arg0[%c0, %c0_0] : memref<144x28xf32, #tpu.memory_space<vmem>>, vector<48x28xf32>
    %c0_1 = arith.constant 0 : index
    %c0_2 = arith.constant 0 : index
    %1 = vector.load %arg1[%c0_1, %c0_2] : memref<528x256xf32, #tpu.memory_space<vmem>>, vector<28x256xf32>
    %cst = arith.constant dense<0.000000e+00> : vector<48x256xf32>
    %2 = tpu.matmul %0, %1, %cst {dimension_numbers = #tpu.dot_dimension_numbers<[1], [0], [0], [1], [0, 0, 1, 1], [], []>} : vector<48x28xf32>, vector<28x256xf32>, vector<48x256xf32> -> vector<48x256xf32>
    %c24 = arith.constant 24 : index
    %c0_3 = arith.constant 0 : index
    %3 = vector.load %arg0[%c24, %c0_3] : memref<144x28xf32, #tpu.memory_space<vmem>>, vector<48x28xf32>
    %c32 = arith.constant 32 : index
    %c0_4 = arith.constant 0 : index
    %4 = vector.load %arg1[%c32, %c0_4] : memref<528x256xf32, #tpu.memory_space<vmem>>, vector<28x256xf32>
    %cst_5 = arith.constant dense<0.000000e+00> : vector<48x256xf32>
    %5 = tpu.matmul %3, %4, %cst_5 {dimension_numbers = #tpu.dot_dimension_numbers<[1], [0], [0], [1], [0, 0, 1, 1], [], []>} : vector<48x28xf32>, vector<28x256xf32>, vector<48x256xf32> -> vector<48x256xf32>
    %6 = arith.addf %2, %5 : vector<48x256xf32>
    %c48 = arith.constant 48 : index
    %c0_6 = arith.constant 0 : index
    %7 = vector.load %arg0[%c48, %c0_6] : memref<144x28xf32, #tpu.memory_space<vmem>>, vector<48x28xf32>
    %c64 = arith.constant 64 : index
    %c0_7 = arith.constant 0 : index
    %8 = vector.load %arg1[%c64, %c0_7] : memref<528x256xf32, #tpu.memory_space<vmem>>, vector<28x256xf32>
    %cst_8 = arith.constant dense<0.000000e+00> : vector<48x256xf32>
    %9 = tpu.matmul %7, %8, %cst_8 {dimension_numbers = #tpu.dot_dimension_numbers<[1], [0], [0], [1], [0, 0, 1, 1], [], []>} : vector<48x28xf32>, vector<28x256xf32>, vector<48x256xf32> -> vector<48x256xf32>
    %10 = arith.addf %6, %9 : vector<48x256xf32>
    %c72 = arith.constant 72 : index
    %c0_9 = arith.constant 0 : index
    %11 = vector.load %arg0[%c72, %c0_9] : memref<144x28xf32, #tpu.memory_space<vmem>>, vector<48x28xf32>
    %c96 = arith.constant 96 : index
    %c0_10 = arith.constant 0 : index
    %12 = vector.load %arg1[%c96, %c0_10] : memref<528x256xf32, #tpu.memory_space<vmem>>, vector<28x256xf32>
    %cst_11 = arith.constant dense<0.000000e+00> : vector<48x256xf32>
    %13 = tpu.matmul %11, %12, %cst_11 {dimension_numbers = #tpu.dot_dimension_numbers<[1], [0], [0], [1], [0, 0, 1, 1], [], []>} : vector<48x28xf32>, vector<28x256xf32>, vector<48x256xf32> -> vector<48x256xf32>
    %14 = arith.addf %10, %13 : vector<48x256xf32>
    %c96_12 = arith.constant 96 : index
    %c0_13 = arith.constant 0 : index
    %15 = vector.load %arg0[%c96_12, %c0_13] : memref<144x28xf32, #tpu.memory_space<vmem>>, vector<48x28xf32>
    %c128 = arith.constant 128 : index
    %c0_14 = arith.constant 0 : index
    %16 = vector.load %arg1[%c128, %c0_14] : memref<528x256xf32, #tpu.memory_space<vmem>>, vector<28x256xf32>
    %cst_15 = arith.constant dense<0.000000e+00> : vector<48x256xf32>
    %17 = tpu.matmul %15, %16, %cst_15 {dimension_numbers = #tpu.dot_dimension_numbers<[1], [0], [0], [1], [0, 0, 1, 1], [], []>} : vector<48x28xf32>, vector<28x256xf32>, vector<48x256xf32> -> vector<48x256xf32>
    %18 = arith.addf %14, %17 : vector<48x256xf32>
    %c520 = arith.constant 520 : index
    %c0_16 = arith.constant 0 : index
    %19 = vector.load %arg1[%c520, %c0_16] : memref<528x256xf32, #tpu.memory_space<vmem>>, vector<1x256xf32>
    %20 = vector.broadcast %19 : vector<1x256xf32> to vector<48x256xf32>
    %21 = arith.addf %18, %20 : vector<48x256xf32>
    %cst_17 = arith.constant 0.000000e+00 : f32
    %22 = vector.broadcast %cst_17 : f32 to vector<48x256xf32>
    %23 = arith.maximumf %21, %22 : vector<48x256xf32>
    %24 = vector.extract_strided_slice %23 {offsets = [0, 0], sizes = [48, 72], strides = [1, 1]} : vector<48x256xf32> to vector<48x72xf32>
    %25 = vector.extract_strided_slice %23 {offsets = [0, 128], sizes = [48, 72], strides = [1, 1]} : vector<48x256xf32> to vector<48x72xf32>
    %26 = arith.maximumf %24, %25 : vector<48x72xf32>
    %27 = vector.extract_strided_slice %26 {offsets = [0, 0], sizes = [24, 72], strides = [1, 1]} : vector<48x72xf32> to vector<24x72xf32>
    %28 = vector.extract_strided_slice %26 {offsets = [24, 0], sizes = [24, 72], strides = [1, 1]} : vector<48x72xf32> to vector<24x72xf32>
    %29 = arith.maximumf %27, %28 : vector<24x72xf32>
    %c521 = arith.constant 521 : index
    %c0_18 = arith.constant 0 : index
    %30 = vector.load %arg1[%c521, %c0_18] : memref<528x256xf32, #tpu.memory_space<vmem>>, vector<1x256xf32>
    %31 = vector.extract_strided_slice %29 {offsets = [0, 0], sizes = [8, 72], strides = [1, 1]} : vector<24x72xf32> to vector<8x72xf32>
    %c160 = arith.constant 160 : index
    %c0_19 = arith.constant 0 : index
    %32 = vector.load %arg1[%c160, %c0_19] : memref<528x256xf32, #tpu.memory_space<vmem>>, vector<72x256xf32>
    %cst_20 = arith.constant dense<0.000000e+00> : vector<8x256xf32>
    %33 = tpu.matmul %31, %32, %cst_20 {dimension_numbers = #tpu.dot_dimension_numbers<[1], [0], [0], [1], [0, 0, 1, 1], [], []>} : vector<8x72xf32>, vector<72x256xf32>, vector<8x256xf32> -> vector<8x256xf32>
    %34 = vector.extract_strided_slice %29 {offsets = [1, 0], sizes = [8, 72], strides = [1, 1]} : vector<24x72xf32> to vector<8x72xf32>
    %c232 = arith.constant 232 : index
    %c0_21 = arith.constant 0 : index
    %35 = vector.load %arg1[%c232, %c0_21] : memref<528x256xf32, #tpu.memory_space<vmem>>, vector<72x256xf32>
    %cst_22 = arith.constant dense<0.000000e+00> : vector<8x256xf32>
    %36 = tpu.matmul %34, %35, %cst_22 {dimension_numbers = #tpu.dot_dimension_numbers<[1], [0], [0], [1], [0, 0, 1, 1], [], []>} : vector<8x72xf32>, vector<72x256xf32>, vector<8x256xf32> -> vector<8x256xf32>
    %37 = arith.addf %33, %36 : vector<8x256xf32>
    %38 = vector.extract_strided_slice %29 {offsets = [2, 0], sizes = [8, 72], strides = [1, 1]} : vector<24x72xf32> to vector<8x72xf32>
    %c304 = arith.constant 304 : index
    %c0_23 = arith.constant 0 : index
    %39 = vector.load %arg1[%c304, %c0_23] : memref<528x256xf32, #tpu.memory_space<vmem>>, vector<72x256xf32>
    %cst_24 = arith.constant dense<0.000000e+00> : vector<8x256xf32>
    %40 = tpu.matmul %38, %39, %cst_24 {dimension_numbers = #tpu.dot_dimension_numbers<[1], [0], [0], [1], [0, 0, 1, 1], [], []>} : vector<8x72xf32>, vector<72x256xf32>, vector<8x256xf32> -> vector<8x256xf32>
    %41 = arith.addf %37, %40 : vector<8x256xf32>
    %42 = vector.extract_strided_slice %29 {offsets = [3, 0], sizes = [8, 72], strides = [1, 1]} : vector<24x72xf32> to vector<8x72xf32>
    %c376 = arith.constant 376 : index
    %c0_25 = arith.constant 0 : index
    %43 = vector.load %arg1[%c376, %c0_25] : memref<528x256xf32, #tpu.memory_space<vmem>>, vector<72x256xf32>
    %cst_26 = arith.constant dense<0.000000e+00> : vector<8x256xf32>
    %44 = tpu.matmul %42, %43, %cst_26 {dimension_numbers = #tpu.dot_dimension_numbers<[1], [0], [0], [1], [0, 0, 1, 1], [], []>} : vector<8x72xf32>, vector<72x256xf32>, vector<8x256xf32> -> vector<8x256xf32>
    %45 = arith.addf %41, %44 : vector<8x256xf32>
    %46 = vector.extract_strided_slice %29 {offsets = [4, 0], sizes = [8, 72], strides = [1, 1]} : vector<24x72xf32> to vector<8x72xf32>
    %c448 = arith.constant 448 : index
    %c0_27 = arith.constant 0 : index
    %47 = vector.load %arg1[%c448, %c0_27] : memref<528x256xf32, #tpu.memory_space<vmem>>, vector<72x256xf32>
    %cst_28 = arith.constant dense<0.000000e+00> : vector<8x256xf32>
    %48 = tpu.matmul %46, %47, %cst_28 {dimension_numbers = #tpu.dot_dimension_numbers<[1], [0], [0], [1], [0, 0, 1, 1], [], []>} : vector<8x72xf32>, vector<72x256xf32>, vector<8x256xf32> -> vector<8x256xf32>
    %49 = arith.addf %45, %48 : vector<8x256xf32>
    %50 = vector.broadcast %30 : vector<1x256xf32> to vector<8x256xf32>
    %51 = arith.addf %49, %50 : vector<8x256xf32>
    %cst_29 = arith.constant 0.000000e+00 : f32
    %52 = vector.broadcast %cst_29 : f32 to vector<8x256xf32>
    %53 = arith.maximumf %51, %52 : vector<8x256xf32>
    %54 = vector.extract_strided_slice %53 {offsets = [0, 0], sizes = [8, 48], strides = [1, 1]} : vector<8x256xf32> to vector<8x48xf32>
    %55 = vector.extract_strided_slice %53 {offsets = [0, 128], sizes = [8, 48], strides = [1, 1]} : vector<8x256xf32> to vector<8x48xf32>
    %56 = arith.maximumf %54, %55 : vector<8x48xf32>
    %57 = vector.extract_strided_slice %56 {offsets = [0, 0], sizes = [1, 48], strides = [1, 1]} : vector<8x48xf32> to vector<1x48xf32>
    %58 = vector.extract_strided_slice %56 {offsets = [1, 0], sizes = [1, 48], strides = [1, 1]} : vector<8x48xf32> to vector<1x48xf32>
    %59 = arith.maximumf %57, %58 : vector<1x48xf32>
    %60 = vector.extract_strided_slice %56 {offsets = [2, 0], sizes = [1, 48], strides = [1, 1]} : vector<8x48xf32> to vector<1x48xf32>
    %61 = vector.extract_strided_slice %56 {offsets = [3, 0], sizes = [1, 48], strides = [1, 1]} : vector<8x48xf32> to vector<1x48xf32>
    %62 = arith.maximumf %60, %61 : vector<1x48xf32>
    %63 = vector.extract_strided_slice %56 {offsets = [4, 0], sizes = [1, 48], strides = [1, 1]} : vector<8x48xf32> to vector<1x48xf32>
    %64 = vector.extract_strided_slice %56 {offsets = [5, 0], sizes = [1, 48], strides = [1, 1]} : vector<8x48xf32> to vector<1x48xf32>
    %65 = arith.maximumf %63, %64 : vector<1x48xf32>
    %66 = vector.extract_strided_slice %56 {offsets = [6, 0], sizes = [1, 48], strides = [1, 1]} : vector<8x48xf32> to vector<1x48xf32>
    %67 = vector.extract_strided_slice %56 {offsets = [7, 0], sizes = [1, 48], strides = [1, 1]} : vector<8x48xf32> to vector<1x48xf32>
    %68 = arith.maximumf %66, %67 : vector<1x48xf32>
    %69 = tpu.concatenate %59, %62, %65, %68 in 1 : vector<1x48xf32>, vector<1x48xf32>, vector<1x48xf32>, vector<1x48xf32> -> vector<1x192xf32>
    %70 = vector.extract_strided_slice %29 {offsets = [12, 0], sizes = [8, 72], strides = [1, 1]} : vector<24x72xf32> to vector<8x72xf32>
    %c160_30 = arith.constant 160 : index
    %c0_31 = arith.constant 0 : index
    %71 = vector.load %arg1[%c160_30, %c0_31] : memref<528x256xf32, #tpu.memory_space<vmem>>, vector<72x256xf32>
    %cst_32 = arith.constant dense<0.000000e+00> : vector<8x256xf32>
    %72 = tpu.matmul %70, %71, %cst_32 {dimension_numbers = #tpu.dot_dimension_numbers<[1], [0], [0], [1], [0, 0, 1, 1], [], []>} : vector<8x72xf32>, vector<72x256xf32>, vector<8x256xf32> -> vector<8x256xf32>
    %73 = vector.extract_strided_slice %29 {offsets = [13, 0], sizes = [8, 72], strides = [1, 1]} : vector<24x72xf32> to vector<8x72xf32>
    %c232_33 = arith.constant 232 : index
    %c0_34 = arith.constant 0 : index
    %74 = vector.load %arg1[%c232_33, %c0_34] : memref<528x256xf32, #tpu.memory_space<vmem>>, vector<72x256xf32>
    %cst_35 = arith.constant dense<0.000000e+00> : vector<8x256xf32>
    %75 = tpu.matmul %73, %74, %cst_35 {dimension_numbers = #tpu.dot_dimension_numbers<[1], [0], [0], [1], [0, 0, 1, 1], [], []>} : vector<8x72xf32>, vector<72x256xf32>, vector<8x256xf32> -> vector<8x256xf32>
    %76 = arith.addf %72, %75 : vector<8x256xf32>
    %77 = vector.extract_strided_slice %29 {offsets = [14, 0], sizes = [8, 72], strides = [1, 1]} : vector<24x72xf32> to vector<8x72xf32>
    %c304_36 = arith.constant 304 : index
    %c0_37 = arith.constant 0 : index
    %78 = vector.load %arg1[%c304_36, %c0_37] : memref<528x256xf32, #tpu.memory_space<vmem>>, vector<72x256xf32>
    %cst_38 = arith.constant dense<0.000000e+00> : vector<8x256xf32>
    %79 = tpu.matmul %77, %78, %cst_38 {dimension_numbers = #tpu.dot_dimension_numbers<[1], [0], [0], [1], [0, 0, 1, 1], [], []>} : vector<8x72xf32>, vector<72x256xf32>, vector<8x256xf32> -> vector<8x256xf32>
    %80 = arith.addf %76, %79 : vector<8x256xf32>
    %81 = vector.extract_strided_slice %29 {offsets = [15, 0], sizes = [8, 72], strides = [1, 1]} : vector<24x72xf32> to vector<8x72xf32>
    %c376_39 = arith.constant 376 : index
    %c0_40 = arith.constant 0 : index
    %82 = vector.load %arg1[%c376_39, %c0_40] : memref<528x256xf32, #tpu.memory_space<vmem>>, vector<72x256xf32>
    %cst_41 = arith.constant dense<0.000000e+00> : vector<8x256xf32>
    %83 = tpu.matmul %81, %82, %cst_41 {dimension_numbers = #tpu.dot_dimension_numbers<[1], [0], [0], [1], [0, 0, 1, 1], [], []>} : vector<8x72xf32>, vector<72x256xf32>, vector<8x256xf32> -> vector<8x256xf32>
    %84 = arith.addf %80, %83 : vector<8x256xf32>
    %85 = vector.extract_strided_slice %29 {offsets = [16, 0], sizes = [8, 72], strides = [1, 1]} : vector<24x72xf32> to vector<8x72xf32>
    %c448_42 = arith.constant 448 : index
    %c0_43 = arith.constant 0 : index
    %86 = vector.load %arg1[%c448_42, %c0_43] : memref<528x256xf32, #tpu.memory_space<vmem>>, vector<72x256xf32>
    %cst_44 = arith.constant dense<0.000000e+00> : vector<8x256xf32>
    %87 = tpu.matmul %85, %86, %cst_44 {dimension_numbers = #tpu.dot_dimension_numbers<[1], [0], [0], [1], [0, 0, 1, 1], [], []>} : vector<8x72xf32>, vector<72x256xf32>, vector<8x256xf32> -> vector<8x256xf32>
    %88 = arith.addf %84, %87 : vector<8x256xf32>
    %89 = vector.broadcast %30 : vector<1x256xf32> to vector<8x256xf32>
    %90 = arith.addf %88, %89 : vector<8x256xf32>
    %cst_45 = arith.constant 0.000000e+00 : f32
    %91 = vector.broadcast %cst_45 : f32 to vector<8x256xf32>
    %92 = arith.maximumf %90, %91 : vector<8x256xf32>
    %93 = vector.extract_strided_slice %92 {offsets = [0, 0], sizes = [8, 48], strides = [1, 1]} : vector<8x256xf32> to vector<8x48xf32>
    %94 = vector.extract_strided_slice %92 {offsets = [0, 128], sizes = [8, 48], strides = [1, 1]} : vector<8x256xf32> to vector<8x48xf32>
    %95 = arith.maximumf %93, %94 : vector<8x48xf32>
    %96 = vector.extract_strided_slice %95 {offsets = [0, 0], sizes = [1, 48], strides = [1, 1]} : vector<8x48xf32> to vector<1x48xf32>
    %97 = vector.extract_strided_slice %95 {offsets = [1, 0], sizes = [1, 48], strides = [1, 1]} : vector<8x48xf32> to vector<1x48xf32>
    %98 = arith.maximumf %96, %97 : vector<1x48xf32>
    %99 = vector.extract_strided_slice %95 {offsets = [2, 0], sizes = [1, 48], strides = [1, 1]} : vector<8x48xf32> to vector<1x48xf32>
    %100 = vector.extract_strided_slice %95 {offsets = [3, 0], sizes = [1, 48], strides = [1, 1]} : vector<8x48xf32> to vector<1x48xf32>
    %101 = arith.maximumf %99, %100 : vector<1x48xf32>
    %102 = vector.extract_strided_slice %95 {offsets = [4, 0], sizes = [1, 48], strides = [1, 1]} : vector<8x48xf32> to vector<1x48xf32>
    %103 = vector.extract_strided_slice %95 {offsets = [5, 0], sizes = [1, 48], strides = [1, 1]} : vector<8x48xf32> to vector<1x48xf32>
    %104 = arith.maximumf %102, %103 : vector<1x48xf32>
    %105 = vector.extract_strided_slice %95 {offsets = [6, 0], sizes = [1, 48], strides = [1, 1]} : vector<8x48xf32> to vector<1x48xf32>
    %106 = vector.extract_strided_slice %95 {offsets = [7, 0], sizes = [1, 48], strides = [1, 1]} : vector<8x48xf32> to vector<1x48xf32>
    %107 = arith.maximumf %105, %106 : vector<1x48xf32>
    %108 = tpu.concatenate %98, %101, %104, %107 in 1 : vector<1x48xf32>, vector<1x48xf32>, vector<1x48xf32>, vector<1x48xf32> -> vector<1x192xf32>
    %109 = tpu.concatenate %69, %108 in 0 : vector<1x192xf32>, vector<1x192xf32> -> vector<2x192xf32>
    %c0_46 = arith.constant 0 : index
    %c0_47 = arith.constant 0 : index
    %110 = vector.load %arg2[%c0_46, %c0_47] : memref<472x128xf32, #tpu.memory_space<vmem>>, vector<192x128xf32>
    %cst_48 = arith.constant dense<0.000000e+00> : vector<2x128xf32>
    %111 = tpu.matmul %109, %110, %cst_48 {dimension_numbers = #tpu.dot_dimension_numbers<[1], [0], [0], [1], [0, 0, 1, 1], [], []>} : vector<2x192xf32>, vector<192x128xf32>, vector<2x128xf32> -> vector<2x128xf32>
    %c192 = arith.constant 192 : index
    %c0_49 = arith.constant 0 : index
    %112 = vector.load %arg2[%c192, %c0_49] : memref<472x128xf32, #tpu.memory_space<vmem>>, vector<1x128xf32>
    %113 = vector.broadcast %112 : vector<1x128xf32> to vector<2x128xf32>
    %114 = arith.addf %111, %113 : vector<2x128xf32>
    %cst_50 = arith.constant 0.000000e+00 : f32
    %115 = vector.broadcast %cst_50 : f32 to vector<2x128xf32>
    %116 = arith.maximumf %114, %115 : vector<2x128xf32>
    %c200 = arith.constant 200 : index
    %c0_51 = arith.constant 0 : index
    %117 = vector.load %arg2[%c200, %c0_51] : memref<472x128xf32, #tpu.memory_space<vmem>>, vector<128x128xf32>
    %cst_52 = arith.constant dense<0.000000e+00> : vector<2x128xf32>
    %118 = tpu.matmul %116, %117, %cst_52 {dimension_numbers = #tpu.dot_dimension_numbers<[1], [0], [0], [1], [0, 0, 1, 1], [], []>} : vector<2x128xf32>, vector<128x128xf32>, vector<2x128xf32> -> vector<2x128xf32>
    %c328 = arith.constant 328 : index
    %c0_53 = arith.constant 0 : index
    %119 = vector.load %arg2[%c328, %c0_53] : memref<472x128xf32, #tpu.memory_space<vmem>>, vector<1x128xf32>
    %120 = vector.broadcast %119 : vector<1x128xf32> to vector<2x128xf32>
    %121 = arith.addf %118, %120 : vector<2x128xf32>
    %cst_54 = arith.constant 0.000000e+00 : f32
    %122 = vector.broadcast %cst_54 : f32 to vector<2x128xf32>
    %123 = arith.maximumf %121, %122 : vector<2x128xf32>
    %c336 = arith.constant 336 : index
    %c0_55 = arith.constant 0 : index
    %124 = vector.load %arg2[%c336, %c0_55] : memref<472x128xf32, #tpu.memory_space<vmem>>, vector<128x128xf32>
    %cst_56 = arith.constant dense<0.000000e+00> : vector<2x128xf32>
    %125 = tpu.matmul %123, %124, %cst_56 {dimension_numbers = #tpu.dot_dimension_numbers<[1], [0], [0], [1], [0, 0, 1, 1], [], []>} : vector<2x128xf32>, vector<128x128xf32>, vector<2x128xf32> -> vector<2x128xf32>
    %c464 = arith.constant 464 : index
    %c0_57 = arith.constant 0 : index
    %126 = vector.load %arg2[%c464, %c0_57] : memref<472x128xf32, #tpu.memory_space<vmem>>, vector<1x128xf32>
    %127 = vector.broadcast %126 : vector<1x128xf32> to vector<2x128xf32>
    %128 = arith.addf %125, %127 : vector<2x128xf32>
    %c0_58 = arith.constant 0 : index
    %c0_59 = arith.constant 0 : index
    %129 = vector.load %arg3[%c0_58, %c0_59] : memref<2x128xf32, #tpu.memory_space<vmem>>, vector<2x128xf32>
    tpu.vector_store %arg3[%c0_58, %c0_59], %128 {strides = array<i32>} : memref<2x128xf32, #tpu.memory_space<vmem>>, vector<2x128xf32>,
    return
  }
}

</mosaic_0001>

<bundles_post_ra>
// kernel: network_forward.1
= control target key start
LH: loop header
LB: loop body
LE: loop exit
PB: predicated region body
PF: predicated region fallthrough
CT: control target
= control target key end

     0   :  { %8 = vsyncpa [#allocation3], 0  ;;  %s3513_s0 = inlined_call_operand.vmem [shape: f32[144,28], index: 0, kind: input, shape index: {}]   ;;  %s3514_s1 = inlined_call_operand.vmem [shape: f32[528,256], index: 1, kind: input, shape index: {}]   ;;  %s3515_s2 = inlined_call_operand.hbm [shape: f32[472,128], index: 2, kind: input, shape index: {}]   ;;  %s3516_s3 = inlined_call_operand.hbm [shape: f32[2,128], index: 3, kind: output, shape index: {}]  }
   0x1   :  { %9 = vsyncpa [#allocation4], 0  ;;  %s2624_s12 = smov [#allocation2]   ;;  %s2576_s16 = scalar_lea.hbm %s3515_s2, 7552 }
   0x2   :  { %s19_s13 = sshll.u32 %s2624_s12, 4  ;;  %p2577_p0 = scmp.ne.s32.totalorder %s3515_s2, %s2576_s16  ;;  %s20_s13 = int_to_ptr.vmem [resolvable:$true] %s19_s13 }
   0x3   :  { %p2580_p1 = scmp.lt.u32.totalorder %s2576_s16, %s3515_s2 }
   0x5   :  { %p2582_p2 = pnand %p2580_p1, %p2577_p0 }
   0x7   :  { %2585 = shalt.err (!%p2582_p2)
}
   0x8   :  { %s2586_s21 = scalar_lea.vmem %s20_s13, 7552  ;;  %p2591_p4 = scmp.lt.s32.totalorder %s20_s13, %s20_s13 }
   0x9   :  { %p2587_p3 = scmp.ne.s32.totalorder %s20_s13, %s2586_s21  ;;  %p2592_p5 = scmp.lt.s32.totalorder %s2586_s21, %s2586_s21 }
   0xb   :  { %p2593_p6 = por %p2592_p5, %p2591_p4 }
   0xd   :  { %p2594_p7 = pnand %p2593_p6, %p2587_p3 }
   0xf   :  { %2597 = shalt.err (!%p2594_p7)
}
  0x10   :  { %s2625_s22 = smov 128   ;;  %s2626_s23 = smov 8  }
  0x11   :  { %25 = dma.hbm_to_vmem [thread:$0]  %s3515_s2, 7552, %s20_s13, [#allocation3], %s2625_s22, %s2625_s22, %s2626_s23  }
  0x12   :  { %2620 = dma.done.wait [#allocation3], 7552  }
  0x13   :  { %2621 = vsyncadd [#allocation3], 4294959744  ;;  %v2627_v0 = vmov 0.0   ;;  %vm73_vm0 = vcmask 1043456   ;;  %v47_v1 = vld [vmem:[%s3514_s1 + $0x48] sm:$0xff]  ;;  %v49_v2 = vld [vmem:[%s3514_s1 + $0x58] sm:$0xff] }
  0x14   :  { %144 = vmatprep.mubr.f32.mxu0 %v2627_v0  ;;  %156 = vmatprep.mubr.f32.mxu1 %v2627_v0  ;;  %v46_v3 = vld [vmem:[%s3514_s1 + $0x40] sm:$0xff]  ;;  %v2198_v4 = vpack.c.bf16 %v49_v2, %v47_v1  ;;  %v48_v5 = vld [vmem:[%s3514_s1 + $0x50] sm:$0xff]  ;;  %v51_v6 = vld [vmem:[%s3514_s1 + $0x68] sm:$0xff]  ;;  %vm2628_vm1 = vmmov 1   ;;  %vm54_vm3 = vcmask 228352   ;;  %vm840_vm4 = vcmask 588800  }
  0x15   :  { %v53_v7 = vld [vmem:[%s3514_s1 + $0x78] sm:$0xf]  ;;  %v2200_v8 = vpack.c.bf16 %v48_v5, %v46_v3  ;;  %vm2688_vm2 = vmpackc.low %vm73_vm0, %vm2628_vm1  ;;  %v50_v11 = vld [vmem:[%s3514_s1 + $0x60] sm:$0xff]  ;;  %vm836_vm5 = vcmask 1046528   ;;  %vm1005_vm6 = vcmask 1045504   ;;  %vm1102_vm7 = vcmask 1044480  }
  0x16   :  { %v2202_v9 = vpack.c.bf16 %v53_v7, %v51_v6  ;;  %v52_v12 = vld [vmem:[%s3514_s1 + $0x70] sm:$0xf]  ;;  %2199 = vmatprep.subr.bf16.mxu0 %v2198_v4  ;;  %v36_v13 = vld [vmem:[%s3514_s1 + $0x8] sm:$0xff]  ;;  %v38_v14 = vld [vmem:[%s3514_s1 + $0x18] sm:$0xff]  ;;  %2492 = vmatprep.subr.bf16.mxu1 %v2198_v4  ;;  %vm1317_vm8 = vcmask 1042432   ;;  %vm1469_vm9 = vcmask 1041408  }
  0x17   :  { %2201 = vmatpush1.bf16.msra.mxu0 %v2200_v8  ;;  %v2205_v15 = vpack.c.bf16 %v52_v12, %v50_v11  ;;  %2494 = vmatpush1.bf16.msra.mxu1 %v2200_v8  ;;  %v2208_v16 = vpack.c.bf16 %v38_v14, %v36_v13  ;;  %v35_v17 = vld [vmem:[%s3514_s1] sm:$0xff]  ;;  %v37_v18 = vld [vmem:[%s3514_s1 + $0x10] sm:$0xff]  ;;  %v40_v19 = vld [vmem:[%s3514_s1 + $0x28] sm:$0xff]  ;;  %vm1548_vm10 = vcmask 1040384   ;;  %s2631_s11 = smov 48   ;;  %s2632_s12 = smov 96  }
  0x18   :  { %2204 = vmatprep.subr.msk.bf16.mxu0 %vm2688_vm2, %v2202_v9  ;;  %2493 = vmatprep.subr.msk.bf16.mxu1 %vm2688_vm2, %v2202_v9  ;;  %v42_v20 = vld [vmem:[%s3514_s1 + $0x38] sm:$0xf]  ;;  %v2210_v22 = vpack.c.bf16 %v37_v18, %v35_v17  ;;  %v39_v24 = vld [vmem:[%s3514_s1 + $0x20] sm:$0xff]  ;;  %v41_v25 = vld [vmem:[%s3514_s1 + $0x30] sm:$0xf]  ;;  %vm1310_vm11 = vcmask 392192  }
  0x19   :  { %v32_v21 = vld [vmem:[%s3513_s0 + $0x18] sm:$0xff]  ;;  %v2212_v23 = vpack.c.bf16 %v42_v20, %v40_v19  ;;  %v304_v26 = vld [vmem:[%s3514_s1 + $0x88] sm:$0xff]  ;;  %v33_v29 = vld [vmem:[%s3513_s0 + $0x20] sm:$0xff]  ;;  %v2215_v30 = vpack.c.bf16 %v41_v25, %v39_v24  ;;  %vm1312_vm12 = vcmask 785408   ;;  %vm1314_vm13 = vcmask 130048   ;;  %s2634_s13 = smov [#allocation5]  }
  0x1a   :  { %v306_v27 = vld [vmem:[%s3514_s1 + $0x98] sm:$0xff]  ;;  %v34_v28 = vld [vmem:[%s3513_s0 + $0x28] sm:$0xff]  ;;  %v303_v32 = vld [vmem:[%s3514_s1 + $0x80] sm:$0xff]  ;;  %vm1764_vm14 = vcmask 523264   ;;  %vm2633_vm15 = vmmov 0   ;;  %s2029_s14 = sshll.u32 %s2634_s13, 4  ;;  %s2030_s14 = int_to_ptr.vmem [resolvable:$true] %s2029_s14 }
  0x1b   :  { %2207 = vmatpush1.bf16.msk.msra.mxu0 %vm2688_vm2, %v2205_v15  ;;  %2495 = vmatpush1.bf16.msk.msra.mxu1 %vm2688_vm2, %v2205_v15  ;;  %v2218_v31 = vpack.c.bf16 %v306_v27, %v304_v26  ;;  %v305_v33 = vld [vmem:[%s3514_s1 + $0x90] sm:$0xff]  ;;  %v308_v34 = vld [vmem:[%s3514_s1 + $0xa8] sm:$0xff]  ;;  %v310_v35 = vld [vmem:[%s3514_s1 + $0xb8] sm:$0xf]  ;;  %s2598_s15 = scalar_lea.vmem %s2030_s14, 32  ;;  %p2603_p9 = scmp.lt.s32.totalorder %s2030_s14, %s2030_s14 }
  0x1c   :  { %2209 = vmatprep.subr.bf16.mxu0 %v2208_v16  ;;  %v297_v36 = vld [vmem:[%s3513_s0 + $0x30] sm:$0xff]  ;;  %v29_v37 = vld [vmem:[%s3513_s0] sm:$0xff]  ;;  %v2220_v38 = vpack.c.bf16 %v305_v33, %v303_v32  ;;  %v2222_v39 = vpack.c.bf16 %v310_v35, %v308_v34  ;;  %v455_v42 = vld [vmem:[%s3514_s1 + $0xc8] sm:$0xff]  ;;  %p2599_p8 = scmp.ne.s32.totalorder %s2030_s14, %s2598_s15  ;;  %p2604_p10 = scmp.lt.s32.totalorder %s2598_s15, %s2598_s15 }
  0x1d   :  { %v307_v40 = vld [vmem:[%s3514_s1 + $0xa0] sm:$0xff]  ;;  %v309_v41 = vld [vmem:[%s3514_s1 + $0xb0] sm:$0xf]  ;;  %v457_v43 = vld [vmem:[%s3514_s1 + $0xd8] sm:$0xff] }
  0x1e   :  { %2040 = vmatmul.mubr.msk.f32.vlgmr.msra.gmra.mrb[0].mxu0 %vm54_vm3, %v32_v21  ;;  %2042 = vmatmul.mubr.msk.f32.vlgmr.msra.gmra.mrb[0].mxu1 %vm54_vm3, %v34_v28  ;;  %v298_v44 = vld [vmem:[%s3513_s0 + $0x38] sm:$0xff]  ;;  %v30_v45 = vld [vmem:[%s3513_s0 + $0x8] sm:$0xff]  ;;  %v2225_v46 = vpack.c.bf16 %v309_v41, %v307_v40  ;;  %v2228_v47 = vpack.c.bf16 %v457_v43, %v455_v42  ;;  %v299_v48 = vld [vmem:[%s3513_s0 + $0x40] sm:$0xff]  ;;  %p2605_p11 = por %p2604_p10, %p2603_p9 }
  0x1f   :  { %2211 = vmatpush1.bf16.msra.mxu0 %v2210_v22  ;;  %150 = vmatprep.mubr.f32.mxu0 %v2627_v0  ;;  %v31_v49 = vld [vmem:[%s3513_s0 + $0x10] sm:$0xff]  ;;  %v454_v50 = vld [vmem:[%s3514_s1 + $0xc0] sm:$0xff]  ;;  %v459_v52 = vld [vmem:[%s3514_s1 + $0xe8] sm:$0xff] }
  0x20   :  { %2214 = vmatprep.subr.msk.bf16.mxu0 %vm2688_vm2, %v2212_v23  ;;  %162 = vmatprep.mubr.f32.mxu1 %v2627_v0  ;;  %v456_v51 = vld [vmem:[%s3514_s1 + $0xd0] sm:$0xff]  ;;  %v461_v53 = vld [vmem:[%s3514_s1 + $0xf8] sm:$0xf]  ;;  %v458_v56 = vld [vmem:[%s3514_s1 + $0xe0] sm:$0xff]  ;;  %p2606_p12 = pnand %p2605_p11, %p2599_p8 }
  0x21   :  { %v2230_v54 = vpack.c.bf16 %v456_v51, %v454_v50  ;;  %v2232_v55 = vpack.c.bf16 %v461_v53, %v459_v52  ;;  %v460_v57 = vld [vmem:[%s3514_s1 + $0xf0] sm:$0xf]  ;;  %v606_v58 = vld [vmem:[%s3514_s1 + $0x108] sm:$0xff]  ;;  %v608_v59 = vld [vmem:[%s3514_s1 + $0x118] sm:$0xff] }
  0x22   :  { %2041 = vmatmul.mubr.msk.f32.gmra.mrb[2].mxu0 %vm54_vm3, %v33_v29  ;;  %2043 = vmatmul.mubr.msk.f32.gmra.mrb[2].mxu1 %vm54_vm3, %v297_v36  ;;  %v2235_v60 = vpack.c.bf16 %v460_v57, %v458_v56  ;;  %v2238_v61 = vpack.c.bf16 %v608_v59, %v606_v58  ;;  %v300_v62 = vld [vmem:[%s3513_s0 + $0x48] sm:$0xff]  ;;  %v301_v63 = vld [vmem:[%s3513_s0 + $0x50] sm:$0xff]  ;;  %v302_v1 = vld [vmem:[%s3513_s0 + $0x58] sm:$0xff] }
  0x23   :  { %2217 = vmatpush1.bf16.msk.msra.mxu0 %vm2688_vm2, %v2215_v30  ;;  %260 = vmatprep.mubr.f32.mxu0 %v2627_v0  ;;  %v605_v2 = vld [vmem:[%s3514_s1 + $0x100] sm:$0xff]  ;;  %v607_v3 = vld [vmem:[%s3514_s1 + $0x110] sm:$0xff]  ;;  %v610_v4 = vld [vmem:[%s3514_s1 + $0x128] sm:$0xff] }
  0x24   :  { %2219 = vmatprep.subr.bf16.mxu0 %v2218_v31  ;;  %168 = vmatprep.mubr.f32.mxu1 %v2627_v0  ;;  %v612_v5 = vld [vmem:[%s3514_s1 + $0x138] sm:$0xf]  ;;  %v2240_v6 = vpack.c.bf16 %v607_v3, %v605_v2  ;;  %v609_v8 = vld [vmem:[%s3514_s1 + $0x120] sm:$0xff]  ;;  %v611_v9 = vld [vmem:[%s3514_s1 + $0x130] sm:$0xf] }
  0x25   :  { %v2242_v7 = vpack.c.bf16 %v612_v5, %v610_v4  ;;  %v2245_v11 = vpack.c.bf16 %v611_v9, %v609_v8  ;;  %v451_v12 = vld [vmem:[%s3513_s0 + $0x60] sm:$0xff]  ;;  %v452_v13 = vld [vmem:[%s3513_s0 + $0x68] sm:$0xff]  ;;  %v453_v10 = vld [vmem:[%s3513_s0 + $0x70] sm:$0xff] }
  0x26   :  { %2048 = vmatmul.mubr.msk.f32.vlgmr.msra.gmra.mrb[0].mxu0 %vm54_vm3, %v29_v37  ;;  %2044 = vmatmul.mubr.msk.f32.gmra.mrb[4].mxu1 %vm54_vm3, %v298_v44  ;;  %v602_v14 = vld [vmem:[%s3513_s0 + $0x78] sm:$0xff]  ;;  %v603_v15 = vld [vmem:[%s3513_s0 + $0x80] sm:$0xff]  ;;  %v604_v16 = vld [vmem:[%s3513_s0 + $0x88] sm:$0xff] }
  0x27   :  { %2221 = vmatpush1.bf16.msra.mxu0 %v2220_v38  ;;  %266 = vmatprep.mubr.f32.mxu0 %v2627_v0  ;;  %v799_v17 = vld [vmem:[%s3514_s1 + $0x148] sm:$0xff]  ;;  %v801_v18 = vld [vmem:[%s3514_s1 + $0x158] sm:$0xff]  ;;  %v798_v20 = vld [vmem:[%s3514_s1 + $0x140] sm:$0xff] }
  0x28   :  { %2224 = vmatprep.subr.msk.bf16.mxu0 %vm2688_vm2, %v2222_v39  ;;  %174 = vmatprep.mubr.f32.mxu1 %v2627_v0  ;;  %v2938_v19 = vpack.c.bf16 %v801_v18, %v799_v17  ;;  %v803_v23 = vld [vmem:[%s3514_s1 + $0x168] sm:$0xff]  ;;  %v805_v24 = vld [vmem:[%s3514_s1 + $0x178] sm:$0xff]  ;;  %v802_v26 = vld [vmem:[%s3514_s1 + $0x160] sm:$0xff]  ;;  %v753_v17 = vlaneseq }
  0x29   :  { %v2956_v25 = vpack.c.bf16 %v805_v24, %v803_v23  ;;  %v804_v27 = vld [vmem:[%s3514_s1 + $0x170] sm:$0xff]  ;;  %v819_v30 = vld [vmem:[%s3514_s1 + $0x1e8] sm:$0xff]  ;;  %v809_v33 = vld [vmem:[%s3514_s1 + $0x198] sm:$0xff] }
  0x2a   :  { %2049 = vmatmul.mubr.msk.f32.gmra.mrb[2].mxu0 %vm54_vm3, %v30_v45  ;;  %2045 = vmatmul.mubr.msk.f32.gmra.mrb[6].mxu1 %vm54_vm3, %v299_v48  ;;  %v807_v31 = vld [vmem:[%s3514_s1 + $0x188] sm:$0xff]  ;;  %v816_v34 = vld [vmem:[%s3514_s1 + $0x1d0] sm:$0xff]  ;;  %v818_v35 = vld [vmem:[%s3514_s1 + $0x1e0] sm:$0xff]  ;;  %v3109_v18 = vshrl.u32 %v753_v17, 7 }
  0x2b   :  { %272 = vmatprep.mubr.f32.mxu0 %v2627_v0  ;;  %2227 = vmatpush1.bf16.msk.msra.mxu0 %vm2688_vm2, %v2225_v46  ;;  %v2990_v37 = vpack.c.bf16 %v818_v35, %v816_v34  ;;  %v806_v38 = vld [vmem:[%s3514_s1 + $0x180] sm:$0xff]  ;;  %v808_v39 = vld [vmem:[%s3514_s1 + $0x190] sm:$0xff]  ;;  %v821_v41 = vld [vmem:[%s3514_s1 + $0x1f8] sm:$0xff] }
  0x2c   :  { %2229 = vmatprep.subr.bf16.mxu0 %v2228_v47  ;;  %980 = vmatprep.mubr.f32.mxu1 %v2627_v0  ;;  %v2999_v40 = vpack.c.bf16 %v808_v39, %v806_v38  ;;  %v823_v42 = vld [vmem:[%s3514_s1 + $0x208] sm:$0xff]  ;;  %v813_v45 = vld [vmem:[%s3514_s1 + $0x1b8] sm:$0xff]  ;;  %v820_v46 = vld [vmem:[%s3514_s1 + $0x1f0] sm:$0xff]  ;;  %v759_v23 = vsub.s32 1, %v3109_v18 }
  0x2d   :  { %2265 = vmatprep.subr.bf16.mxu1 %v2938_v19  ;;  %v811_v43 = vld [vmem:[%s3514_s1 + $0x1a8] sm:$0xff]  ;;  %v822_v47 = vld [vmem:[%s3514_s1 + $0x200] sm:$0xff]  ;;  %v812_v51 = vld [vmem:[%s3514_s1 + $0x1b0] sm:$0xff] }
  0x2e   :  { %2050 = vmatmul.mubr.msk.f32.gmra.mrb[4].mxu0 %vm54_vm3, %v31_v49  ;;  %v3026_v49 = vpack.c.bf16 %v822_v47, %v820_v46  ;;  %v810_v50 = vld [vmem:[%s3514_s1 + $0x1a0] sm:$0xff]  ;;  %v825_v53 = vld [vmem:[%s3514_s1 + $0x218] sm:$0xff]  ;;  %v824_v56 = vld [vmem:[%s3514_s1 + $0x210] sm:$0xff] }
  0x2f   :  { %278 = vmatprep.mubr.f32.mxu0 %v2627_v0  ;;  %v3035_v52 = vpack.c.bf16 %v812_v51, %v810_v50  ;;  %v826_v57 = vld [vmem:[%s3514_s1 + $0x220] sm:$0xff]  ;;  %v3057_v58 = vld [vmem:[%s3514_s1 + $0x1c8] sm:$0xff]  ;;  %v828_v4 = vld [vmem:[%s3514_s1 + $0x230] sm:$0xff] }
  0x30   :  { %v3059_v59 = vpack.c.bf16 %v826_v57, %v824_v56  ;;  %v831_v2 = vld [vmem:[%s3514_s1 + $0x248] sm:$0xff]  ;;  %v830_v5 = vld [vmem:[%s3514_s1 + $0x240] sm:$0xff]  ;;  %v3106_v8 = vld [vmem:[%s3514_s1 + $0x250] sm:$0xff] }
  0x32   :  { %2051 = vmatmul.mubr.msk.f32.gmra.mrb[6].mxu0 %vm54_vm3, %v32_v21  ;;  %v800_v21 = vld [vmem:[%s3514_s1 + $0x150] sm:$0xff] }
  0x33   :  { %284 = vmatprep.mubr.f32.mxu0 %v2627_v0  ;;  %v2946_v22 = vpack.c.bf16 %v800_v21, %v798_v20  ;;  %v755_v20 = vsub.s32 0, %v3109_v18  ;;  %v2078_v21 = vld [vmem:[%s3514_s1 + $0x410] ss:$8 sm:$0x3] }
  0x34   :  { %v1748_v18 = vld [vmem:[#allocation2 + $0x68] sm:$0xff] }
  0x35   :  { %2267 = vmatpush1.bf16.msra.mxu1 %v2946_v22  ;;  %v756_v24 = vrot.slane %v2078_v21, %v755_v20 }
  0x36   :  { %2052 = vmatmul.mubr.msk.f32.gmra.mrb[8].mxu0 %vm54_vm3, %v33_v29  ;;  %2269 = vmatprep.subr.bf16.mxu1 %v2956_v25  ;;  %v817_v29 = vld [vmem:[%s3514_s1 + $0x1d8] sm:$0xff] }
  0x37   :  { %290 = vmatprep.mubr.f32.mxu0 %v2627_v0  ;;  %v2977_v32 = vpack.c.bf16 %v819_v30, %v817_v29 }
  0x3a   :  { %2053 = vmatmul.mubr.msk.f32.gmra.mrb[10].mxu0 %vm54_vm3, %v34_v28  ;;  %v2964_v28 = vpack.c.bf16 %v804_v27, %v802_v26  ;;  %v760_v26 = vrot.slane %v2078_v21, %v759_v23 }
  0x3b   :  { %399 = vmatprep.mubr.f32.mxu0 %v2627_v0 }
  0x3c   :  { %2271 = vmatpush1.bf16.msra.mxu1 %v2964_v28 }
  0x3e   :  { %2056 = vmatmul.mubr.msk.f32.vlgmr.msra.gmra.mrb[0].mxu0 %vm54_vm3, %v297_v36  ;;  %v2988_v36 = vpack.c.bf16 %v809_v33, %v807_v31 }
  0x3f   :  { %2231 = vmatpush1.bf16.msra.mxu0 %v2230_v54  ;;  %405 = vmatprep.mubr.f32.mxu0 %v2627_v0  ;;  %v827_v54 = vld [vmem:[%s3514_s1 + $0x228] sm:$0xff] }
  0x40   :  { %2234 = vmatprep.subr.msk.bf16.mxu0 %vm2688_vm2, %v2232_v55  ;;  %2273 = vmatprep.subr.bf16.mxu1 %v2988_v36  ;;  %v3046_v55 = vpack.c.bf16 %v827_v54, %v825_v53 }
  0x41   :  { %2275 = vmatpush1.bf16.msra.mxu1 %v2999_v40 }
  0x42   :  { %2057 = vmatmul.mubr.msk.f32.gmra.mrb[2].mxu0 %vm54_vm3, %v298_v44  ;;  %v3013_v44 = vpack.c.bf16 %v823_v42, %v821_v41 }
  0x43   :  { %411 = vmatprep.mubr.f32.mxu0 %v2627_v0  ;;  %2237 = vmatpush1.bf16.msk.msra.mxu0 %vm2688_vm2, %v2235_v60  ;;  %v988_v60 = vld [vmem:[%s3514_s1 + $0x268] sm:$0xff] }
  0x44   :  { %2239 = vmatprep.subr.bf16.mxu0 %v2238_v61  ;;  %v990_v61 = vld [vmem:[%s3514_s1 + $0x278] sm:$0xff] }
  0x46   :  { %2058 = vmatmul.mubr.msk.f32.gmra.mrb[4].mxu0 %vm54_vm3, %v299_v48  ;;  %v3024_v48 = vpack.c.bf16 %v813_v45, %v811_v43 }
  0x47   :  { %417 = vmatprep.mubr.f32.mxu0 %v2627_v0 }
  0x48   :  { %2277 = vmatprep.subr.bf16.mxu1 %v3024_v48 }
  0x49   :  { %2279 = vmatpush1.bf16.msra.mxu1 %v3035_v52 }
  0x4a   :  { %2059 = vmatmul.mubr.msk.f32.gmra.mrb[6].mxu0 %vm54_vm3, %v300_v62  ;;  %932 = vmatprep.subr.mxu1 %v3057_v58 }
  0x4b   :  { %423 = vmatprep.mubr.f32.mxu0 %v2627_v0 }
  0x4e   :  { %2060 = vmatmul.mubr.msk.f32.gmra.mrb[8].mxu0 %vm54_vm3, %v301_v63 }
  0x4f   :  { %429 = vmatprep.mubr.f32.mxu0 %v2627_v0 }
  0x52   :  { %2061 = vmatmul.mubr.msk.f32.gmra.mrb[10].mxu0 %vm54_vm3, %v302_v1 }
  0x53   :  { %550 = vmatprep.mubr.f32.mxu0 %v2627_v0 }
  0x56   :  { %2064 = vmatmul.mubr.msk.f32.vlgmr.msra.gmra.mrb[0].mxu0 %vm54_vm3, %v300_v62  ;;  %v3072_v62 = vld [vmem:[%s3514_s1 + $0x1c0] sm:$0xff] }
  0x57   :  { %2241 = vmatpush1.bf16.msra.mxu0 %v2240_v6  ;;  %556 = vmatprep.mubr.f32.mxu0 %v2627_v0  ;;  %v3093_v6 = vpack.c.bf16 %v830_v5, %v828_v4 }
  0x58   :  { %2244 = vmatprep.subr.msk.bf16.mxu0 %vm2688_vm2, %v2242_v7  ;;  %933 = vmatpush1.msra.mxu1 %v3072_v62  ;;  %v3100_v7 = vld [vmem:[%s3514_s1 + $0x258] sm:$0xff] }
  0x5a   :  { %2065 = vmatmul.mubr.msk.f32.gmra.mrb[2].mxu0 %vm54_vm3, %v301_v63  ;;  %v3074_v63 = vpack.c.bf16 %v990_v61, %v988_v60 }
  0x5b   :  { %562 = vmatprep.mubr.f32.mxu0 %v2627_v0  ;;  %2247 = vmatpush1.bf16.msk.msra.mxu0 %vm2688_vm2, %v2245_v11 }
  0x5c   :  { %2249 = vmatprep.subr.bf16.mxu0 %v2977_v32  ;;  %2281 = vmatprep.subr.bf16.mxu1 %v3074_v63 }
  0x5e   :  { %2066 = vmatmul.mubr.msk.f32.gmra.mrb[4].mxu0 %vm54_vm3, %v302_v1  ;;  %v829_v1 = vld [vmem:[%s3514_s1 + $0x238] sm:$0xff] }
  0x5f   :  { %568 = vmatprep.mubr.f32.mxu0 %v2627_v0  ;;  %v3085_v3 = vpack.c.bf16 %v831_v2, %v829_v1 }
  0x62   :  { %2067 = vmatmul.mubr.msk.f32.gmra.mrb[6].mxu0 %vm54_vm3, %v451_v12 }
  0x63   :  { %574 = vmatprep.mubr.f32.mxu0 %v2627_v0 }
  0x66   :  { %2068 = vmatmul.mubr.msk.f32.gmra.mrb[8].mxu0 %vm54_vm3, %v452_v13 }
  0x67   :  { %580 = vmatprep.mubr.f32.mxu0 %v2627_v0 }
  0x6a   :  { %2069 = vmatmul.mubr.msk.f32.gmra.mrb[10].mxu0 %vm54_vm3, %v453_v10 }
  0x6b   :  { %701 = vmatprep.mubr.f32.mxu0 %v2627_v0 }
  0x6e   :  { %2072 = vmatmul.mubr.msk.f32.vlgmr.msra.gmra.mrb[0].mxu0 %vm54_vm3, %v451_v12 }
  0x6f   :  { %707 = vmatprep.mubr.f32.mxu0 %v2627_v0  ;;  %2251 = vmatpush1.bf16.msra.mxu0 %v2990_v37 }
  0x70   :  { %2253 = vmatprep.subr.bf16.mxu0 %v3013_v44 }
  0x72   :  { %2073 = vmatmul.mubr.msk.f32.gmra.mrb[2].mxu0 %vm54_vm3, %v452_v13 }
  0x73   :  { %713 = vmatprep.mubr.f32.mxu0 %v2627_v0  ;;  %2255 = vmatpush1.bf16.msra.mxu0 %v3026_v49 }
  0x74   :  { %2257 = vmatprep.subr.bf16.mxu0 %v3046_v55 }
  0x76   :  { %2074 = vmatmul.mubr.msk.f32.gmra.mrb[4].mxu0 %vm54_vm3, %v453_v10 }
  0x77   :  { %719 = vmatprep.mubr.f32.mxu0 %v2627_v0  ;;  %2259 = vmatpush1.bf16.msra.mxu0 %v3059_v59 }
  0x78   :  { %2261 = vmatprep.subr.bf16.mxu0 %v3085_v3 }
  0x7a   :  { %2075 = vmatmul.mubr.msk.f32.gmra.mrb[6].mxu0 %vm54_vm3, %v602_v14 }
  0x7b   :  { %725 = vmatprep.mubr.f32.mxu0 %v2627_v0  ;;  %2263 = vmatpush1.bf16.msra.mxu0 %v3093_v6 }
  0x7c   :  { %859 = vmatprep.subr.mxu0 %v3100_v7 }
  0x7e   :  { %2076 = vmatmul.mubr.msk.f32.gmra.mrb[8].mxu0 %vm54_vm3, %v603_v15 }
  0x7f   :  { %731 = vmatprep.mubr.f32.mxu0 %v2627_v0  ;;  %860 = vmatpush1.msra.mxu0 %v3106_v8 }
  0x82   :  { %2077 = vmatmul.mubr.msk.f32.gmra.mrb[10].mxu0 %vm54_vm3, %v604_v16 }
  0x83   :  { %907 = vmatprep.mubr.f32.mxu0 %v2627_v0 }
  0xf1   :  { %v158_v9 = vpop.f32.mrb[0].mxu1 }
  0xf2   :  { %v160_v11 = vpop.f32.mrb[1].mxu1 }
  0xf5   :  { %v164_v12 = vpop.f32.mrb[2].mxu1 }
  0xf6   :  { %v166_v13 = vpop.f32.mrb[3].mxu1 }
  0xf9   :  { %v170_v10 = vpop.f32.mrb[4].mxu1 }
  0xfa   :  { %v172_v14 = vpop.f32.mrb[5].mxu1 }
  0xfd   :  { %v176_v15 = vpop.f32.mrb[6].mxu1 }
  0xfe   :  { %v178_v16 = vpop.f32.mrb[7].mxu1 }
 0x141   :  { %v703_v27 = vpop.f32.mrb[0].mxu0 }
 0x142   :  { %v763_v29 = vadd.f32 %v756_v24, %v703_v27  ;;  %v705_v30 = vpop.f32.mrb[1].mxu0 }
 0x143   :  { %v764_v31 = vadd.f32 %v760_v26, %v705_v30 }
 0x144   :  { %v775_v33 = vmax.f32 %v763_v29, 0.0 }
 0x145   :  { %v776_v34 = vmax.f32 %v764_v31, 0.0  ;;  %v709_v35 = vpop.f32.mrb[2].mxu0 }
 0x146   :  { %v765_v38 = vadd.f32 %v756_v24, %v709_v35  ;;  %v711_v39 = vpop.f32.mrb[3].mxu0 }
 0x147   :  { %v787_v41 = vmax.f32 %v775_v33, %v776_v34  ;;  %v766_v42 = vadd.f32 %v760_v26, %v711_v39 }
 0x148   :  { %v777_v43 = vmax.f32 %v765_v38, 0.0 }
 0x149   :  { %v778_v45 = vmax.f32 %v766_v42, 0.0  ;;  %v715_v46 = vpop.f32.mrb[4].mxu0 }
 0x14a   :  { %v2496_v47 = vadd.f32 %v715_v46, %v158_v9  ;;  %v717_v50 = vpop.f32.mrb[5].mxu0 }
 0x14b   :  { %v788_v51 = vmax.f32 %v777_v43, %v778_v45  ;;  %v2497_v53 = vadd.f32 %v717_v50, %v160_v11  ;;  %v987_v11 = vld [vmem:[%s3514_s1 + $0x260] sm:$0xff] }
 0x14c   :  { %v767_v54 = vadd.f32 %v2496_v47, %v756_v24 }
 0x14d   :  { %v768_v56 = vadd.f32 %v2497_v53, %v760_v26  ;;  %v721_v57 = vpop.f32.mrb[6].mxu0 }
 0x14e   :  { %v779_v60 = vmax.f32 %v767_v54, 0.0  ;;  %v2498_v61 = vadd.f32 %v721_v57, %v164_v12  ;;  %v723_v1 = vpop.f32.mrb[7].mxu0  ;;  %v989_v12 = vld [vmem:[%s3514_s1 + $0x270] sm:$0xff]  ;;  %v991_v54 = vld [vmem:[%s3514_s1 + $0x280] sm:$0xff] }
 0x14f   :  { %v780_v2 = vmax.f32 %v768_v56, 0.0  ;;  %v2499_v4 = vadd.f32 %v723_v1, %v166_v13  ;;  %v992_v13 = vld [vmem:[%s3514_s1 + $0x288] sm:$0xff]  ;;  %v3132_v45 = vpack.c.bf16 %v989_v12, %v987_v11  ;;  %v993_v56 = vld [vmem:[%s3514_s1 + $0x290] sm:$0xff] }
 0x150   :  { %v769_v5 = vadd.f32 %v2498_v61, %v756_v24  ;;  %v3150_v1 = vpack.c.bf16 %v993_v56, %v991_v54  ;;  %v1087_v54 = vld [vmem:[%s3514_s1 + $0x308] sm:$0xff]  ;;  %v1084_v56 = vld [vmem:[%s3514_s1 + $0x2f0] sm:$0xff] }
 0x151   :  { %v789_v17 = vmax.f32 %v779_v60, %v780_v2  ;;  %v770_v21 = vadd.f32 %v2499_v4, %v760_v26  ;;  %v727_v27 = vpop.f32.mrb[8].mxu0 }
 0x152   :  { %v781_v29 = vmax.f32 %v769_v5, 0.0  ;;  %v2500_v30 = vadd.f32 %v727_v27, %v170_v10  ;;  %v729_v31 = vpop.f32.mrb[9].mxu0  ;;  %v994_v10 = vld [vmem:[%s3514_s1 + $0x298] sm:$0xff]  ;;  %v997_v5 = vld [vmem:[%s3514_s1 + $0x2b0] sm:$0xff] }
 0x153   :  { %v782_v33 = vmax.f32 %v770_v21, 0.0  ;;  %v2501_v9 = vadd.f32 %v729_v31, %v172_v14  ;;  %v3134_v53 = vpack.c.bf16 %v994_v10, %v992_v13  ;;  %v1000_v21 = vld [vmem:[%s3514_s1 + $0x2c8] sm:$0xff]  ;;  %v1002_v27 = vld [vmem:[%s3514_s1 + $0x2d8] sm:$0xff] }
 0x154   :  { %v771_v34 = vadd.f32 %v2500_v30, %v756_v24 }
 0x155   :  { %v790_v35 = vmax.f32 %v781_v29, %v782_v33  ;;  %v772_v38 = vadd.f32 %v2501_v9, %v760_v26  ;;  %v733_v14 = vpop.f32.mrb[10].mxu0 }
 0x156   :  { %v783_v39 = vmax.f32 %v771_v34, 0.0  ;;  %v2502_v42 = vadd.f32 %v733_v14, %v176_v15  ;;  %v735_v43 = vpop.f32.mrb[11].mxu0  ;;  %v996_v15 = vld [vmem:[%s3514_s1 + $0x2a8] sm:$0xff]  ;;  %v3176_v34 = vpack.c.bf16 %v1002_v27, %v1000_v21  ;;  %v999_v14 = vld [vmem:[%s3514_s1 + $0x2c0] sm:$0xff]  ;;  %v1093_v21 = vld [vmem:[%s3514_s1 + $0x338] sm:$0xff] }
 0x157   :  { %v793_v46 = vmax.f32 %v787_v41, %v790_v35  ;;  %v784_v47 = vmax.f32 %v772_v38, 0.0  ;;  %v2503_v50 = vadd.f32 %v735_v43, %v178_v16  ;;  %v998_v41 = vld [vmem:[%s3514_s1 + $0x2b8] sm:$0xff]  ;;  %v1095_v27 = vld [vmem:[%s3514_s1 + $0x348] sm:$0xff] }
 0x158   :  { %v773_v57 = vadd.f32 %v2502_v42, %v756_v24  ;;  %v995_v24 = vld [vmem:[%s3514_s1 + $0x2a0] sm:$0xff] }
 0x159   :  { %v791_v16 = vmax.f32 %v783_v39, %v784_v47  ;;  %v774_v60 = vadd.f32 %v2503_v50, %v760_v26  ;;  %2081 = vmatmul.mubr.msk.f32.vlgmr.msra.gmra.mrb[8].mxu1 %vm840_vm4, %v793_v46  ;;  %v3159_v26 = vpack.c.bf16 %v998_v41, %v996_v15  ;;  %v1006_v29 = vrot.slane %v793_v46, 2  ;;  %v1001_v39 = vld [vmem:[%s3514_s1 + $0x2d0] sm:$0xff]  ;;  %v3204_v47 = vld [vmem:[%s3514_s1 + $0x2e8] sm:$0xff]  ;;  %v1085_v50 = vld [vmem:[%s3514_s1 + $0x2f8] sm:$0xff] }
 0x15a   :  { %v785_v61 = vmax.f32 %v773_v57, 0.0  ;;  %2283 = vmatpush1.bf16.msra.mxu1 %v3132_v45  ;;  %1075 = vmatprep.mubr.f32.mxu1 %v2627_v0  ;;  %v1103_v30 = vrot.slane %v793_v46, 3  ;;  %v3174_v12 = vpack.c.bf16 %v997_v5, %v995_v24  ;;  %v1199_v13 = vrot.slane %v793_v46, 4  ;;  %v1086_v57 = vld [vmem:[%s3514_s1 + $0x300] sm:$0xff]  ;;  %v1089_v15 = vld [vmem:[%s3514_s1 + $0x318] sm:$0xff]  ;;  %v1091_v41 = vld [vmem:[%s3514_s1 + $0x328] sm:$0xff] }
 0x15b   :  { %v3156_v2 = vmax.f32 %v788_v51, %v791_v16  ;;  %v786_v4 = vmax.f32 %v774_v60, 0.0  ;;  %2285 = vmatprep.subr.bf16.mxu1 %v3134_v53  ;;  %v837_v51 = vrot.slane %v793_v46, 1  ;;  %v3198_v46 = vpack.c.bf16 %v1001_v39, %v999_v14  ;;  %v3229_v16 = vld [vmem:[%s3514_s1 + $0x2e0] sm:$0xff] }
 0x15c   :  { %v3231_v60 = vpack.c.bf16 %v1087_v54, %v1085_v50  ;;  %v3235_v24 = vpack.c.bf16 %v1091_v41, %v1089_v15  ;;  %v1090_v5 = vld [vmem:[%s3514_s1 + $0x320] sm:$0xff]  ;;  %v1182_v50 = vld [vmem:[%s3514_s1 + $0x388] sm:$0xff]  ;;  %v1184_v54 = vld [vmem:[%s3514_s1 + $0x398] sm:$0xff] }
 0x15d   :  { %v792_v31 = vmax.f32 %v785_v61, %v786_v4  ;;  %v838_v33 = vrot.slane %v3156_v2, 1  ;;  %v1007_v9 = vrot.slane %v3156_v2, 2  ;;  %v1104_v11 = vrot.slane %v3156_v2, 3  ;;  %v1088_v4 = vld [vmem:[%s3514_s1 + $0x310] sm:$0xff]  ;;  %v1098_v14 = vld [vmem:[%s3514_s1 + $0x360] sm:$0xff]  ;;  %v1186_v15 = vld [vmem:[%s3514_s1 + $0x3a8] sm:$0xff] }
 0x15e   :  { %2287 = vmatpush1.bf16.msra.mxu1 %v3150_v1  ;;  %v1200_v10 = vrot.slane %v3156_v2, 4  ;;  %v3233_v61 = vpack.c.bf16 %v1086_v57, %v1084_v56  ;;  %v1181_v56 = vld [vmem:[%s3514_s1 + $0x380] sm:$0xff]  ;;  %v1183_v57 = vld [vmem:[%s3514_s1 + $0x390] sm:$0xff]  ;;  %v1188_v41 = vld [vmem:[%s3514_s1 + $0x3b8] sm:$0xff] }
 0x15f   :  { %v3179_v35 = vmax.f32 %v789_v17, %v792_v31  ;;  %v839_v38 = vsel %vm836_vm5, %v837_v51, %v838_v33  ;;  %2289 = vmatprep.subr.bf16.mxu1 %v3159_v26  ;;  %v1008_v42 = vsel %vm1005_vm6, %v1006_v29, %v1007_v9  ;;  %v1105_v43 = vsel %vm1102_vm7, %v1103_v30, %v1104_v11  ;;  %v1092_v30 = vld [vmem:[%s3514_s1 + $0x330] sm:$0xff]  ;;  %v1094_v31 = vld [vmem:[%s3514_s1 + $0x340] sm:$0xff]  ;;  %v1097_v33 = vld [vmem:[%s3514_s1 + $0x358] sm:$0xff] }
 0x160   :  { %2080 = vmatmul.mubr.msk.f32.vlgmr.msra.gmra.mrb[12].mxu0 %vm840_vm4, %v839_v38  ;;  %v3195_v17 = vsel %vm73_vm0, %v1199_v13, %v1200_v10  ;;  %v3253_v51 = vpack.c.bf16 %v1090_v5, %v1088_v4  ;;  %v3257_v29 = vpack.c.bf16 %v1095_v27, %v1093_v21  ;;  %v1099_v9 = vld [vmem:[%s3514_s1 + $0x368] sm:$0xff]  ;;  %v3272_v11 = vpack.c.bf16 %v1094_v31, %v1092_v30  ;;  %v1096_v38 = vld [vmem:[%s3514_s1 + $0x350] sm:$0xff]  ;;  %v1185_v30 = vld [vmem:[%s3514_s1 + $0x3a0] sm:$0xff] }
 0x161   :  { %v3275_v13 = vpack.c.bf16 %v1099_v9, %v1097_v33  ;;  %v3284_v39 = vpack.c.bf16 %v1098_v14, %v1096_v38  ;;  %v3315_v4 = vld [vmem:[%s3514_s1 + $0x370] sm:$0xff]  ;;  %v3317_v5 = vpack.c.bf16 %v1184_v54, %v1182_v50  ;;  %v3319_v21 = vpack.c.bf16 %v1183_v57, %v1181_v56  ;;  %v1190_v33 = vld [vmem:[%s3514_s1 + $0x3c8] sm:$0xff]  ;;  %v1192_v9 = vld [vmem:[%s3514_s1 + $0x3d8] sm:$0xff] }
 0x162   :  { %2291 = vmatpush1.bf16.msra.mxu1 %v3174_v12  ;;  %v3321_v27 = vpack.c.bf16 %v1188_v41, %v1186_v15  ;;  %v1187_v31 = vld [vmem:[%s3514_s1 + $0x3b0] sm:$0xff]  ;;  %v3343_v14 = vpack.c.bf16 %v1192_v9, %v1190_v33  ;;  %v1189_v50 = vld [vmem:[%s3514_s1 + $0x3c0] sm:$0xff]  ;;  %v1194_v54 = vld [vmem:[%s3514_s1 + $0x3e8] sm:$0xff] }
 0x163   :  { %2293 = vmatprep.subr.bf16.mxu1 %v3176_v34  ;;  %v3339_v38 = vpack.c.bf16 %v1187_v31, %v1185_v30  ;;  %v1196_v56 = vld [vmem:[%s3514_s1 + $0x3f8] sm:$0xff]  ;;  %v1193_v41 = vld [vmem:[%s3514_s1 + $0x3e0] sm:$0xff]  ;;  %v1195_v30 = vld [vmem:[%s3514_s1 + $0x3f0] sm:$0xff] }
 0x164   :  { %v3361_v15 = vpack.c.bf16 %v1196_v56, %v1194_v54  ;;  %v3370_v31 = vpack.c.bf16 %v1195_v30, %v1193_v41  ;;  %v3376_v33 = vld [vmem:[%s3514_s1 + $0x408] sm:$0xff]  ;;  %v3383_v9 = vld [vmem:[%s3514_s1 + $0x400] sm:$0xff]  ;;  %v1753_v54 = vld [vmem:[#allocation2 + $0x90] sm:$0xff] }
 0x165   :  { %v1754_v56 = vld [vmem:[#allocation2 + $0x98] sm:$0xff] }
 0x166   :  { %2295 = vmatpush1.bf16.msra.mxu1 %v3198_v46  ;;  %v2436_v41 = vpack.c.bf16 %v1754_v56, %v1753_v54  ;;  %v1852_v54 = vld [vmem:[#allocation2 + $0x130] sm:$0xff] }
 0x167   :  { %1027 = vmatprep.subr.mxu1 %v3204_v47 }
 0x16a   :  { %1028 = vmatpush1.msra.mxu1 %v3229_v16 }
 0x16b   :  { %2082 = vmatmul.mubr.msk.f32.vlgmr.msra.gmra.mrb[8].mxu1 %vm840_vm4, %v1008_v42  ;;  %2297 = vmatprep.subr.bf16.mxu1 %v3231_v60  ;;  %v3290_v42 = vld [vmem:[%s3514_s1 + $0x378] sm:$0xff] }
 0x16c   :  { %2299 = vmatpush1.bf16.msra.mxu1 %v3233_v61  ;;  %1172 = vmatprep.mubr.f32.mxu1 %v2627_v0 }
 0x16d   :  { %2301 = vmatprep.subr.bf16.mxu1 %v3235_v24 }
 0x170   :  { %2303 = vmatpush1.bf16.msra.mxu1 %v3253_v51 }
 0x171   :  { %2305 = vmatprep.subr.bf16.mxu1 %v3257_v29 }
 0x174   :  { %2307 = vmatpush1.bf16.msra.mxu1 %v3272_v11 }
 0x175   :  { %2309 = vmatprep.subr.bf16.mxu1 %v3275_v13 }
 0x178   :  { %2311 = vmatpush1.bf16.msra.mxu1 %v3284_v39 }
 0x179   :  { %1124 = vmatprep.subr.mxu1 %v3290_v42 }
 0x17c   :  { %1125 = vmatpush1.msra.mxu1 %v3315_v4 }
 0x17d   :  { %2083 = vmatmul.mubr.msk.f32.vlgmr.msra.gmra.mrb[8].mxu1 %vm840_vm4, %v1105_v43  ;;  %2313 = vmatprep.subr.bf16.mxu1 %v3317_v5  ;;  %v1191_v43 = vld [vmem:[%s3514_s1 + $0x3d0] sm:$0xff] }
 0x17e   :  { %2315 = vmatpush1.bf16.msra.mxu1 %v3319_v21  ;;  %1268 = vmatprep.mubr.f32.mxu1 %v2627_v0  ;;  %v3358_v57 = vpack.c.bf16 %v1191_v43, %v1189_v50 }
 0x17f   :  { %2317 = vmatprep.subr.bf16.mxu1 %v3321_v27 }
 0x182   :  { %2319 = vmatpush1.bf16.msra.mxu1 %v3339_v38 }
 0x183   :  { %2321 = vmatprep.subr.bf16.mxu1 %v3343_v14 }
 0x186   :  { %2323 = vmatpush1.bf16.msra.mxu1 %v3358_v57 }
 0x187   :  { %2325 = vmatprep.subr.bf16.mxu1 %v3361_v15 }
 0x18a   :  { %2327 = vmatpush1.bf16.msra.mxu1 %v3370_v31 }
 0x18b   :  { %1220 = vmatprep.subr.mxu1 %v3376_v33 }
 0x18e   :  { %1221 = vmatpush1.msra.mxu1 %v3383_v9 }
 0x18f   :  { %2084 = vmatmul.mubr.msk.f32.vlgmr.msra.gmra.mrb[8].mxu1 %vm840_vm4, %v3195_v17  ;;  %2329 = vmatprep.subr.bf16.mxu1 %v2977_v32  ;;  %v1319_v17 = vrot.slane %v3179_v35, 5  ;;  %v1318_v32 = vrot.slane %v3156_v2, 5 }
 0x190   :  { %2331 = vmatpush1.bf16.msra.mxu1 %v2990_v37  ;;  %1387 = vmatprep.mubr.f32.mxu1 %v2627_v0 }
 0x191   :  { %2333 = vmatprep.subr.bf16.mxu1 %v3013_v44  ;;  %v1320_v37 = vsel %vm1317_vm8, %v1318_v32, %v1319_v17  ;;  %v1394_v44 = vrot.slane %v3179_v35, 4  ;;  %v1755_v17 = vld [vmem:[#allocation2 + $0xa0] sm:$0xff]  ;;  %v1756_v32 = vld [vmem:[#allocation2 + $0xa8] sm:$0xff] }
 0x194   :  { %2335 = vmatpush1.bf16.msra.mxu1 %v3026_v49 }
 0x195   :  { %2337 = vmatprep.subr.bf16.mxu1 %v3046_v55  ;;  %v1735_v55 = vld [vmem:[#allocation2] sm:$0xff] }
 0x198   :  { %2339 = vmatpush1.bf16.msra.mxu1 %v3059_v59  ;;  %v1737_v59 = vld [vmem:[#allocation2 + $0x10] sm:$0xff] }
 0x199   :  { %2341 = vmatprep.subr.bf16.mxu1 %v3085_v3  ;;  %v1738_v3 = vld [vmem:[#allocation2 + $0x18] sm:$0xff] }
 0x19c   :  { %2343 = vmatpush1.bf16.msra.mxu1 %v3093_v6  ;;  %v2412_v6 = vpack.c.bf16 %v1738_v3, %v1737_v59 }
 0x19d   :  { %1339 = vmatprep.subr.mxu1 %v3100_v7  ;;  %v1739_v7 = vld [vmem:[#allocation2 + $0x20] sm:$0xff] }
 0x1a0   :  { %1340 = vmatpush1.msra.mxu1 %v3106_v8  ;;  %v1740_v8 = vld [vmem:[#allocation2 + $0x28] sm:$0xff] }
 0x1a1   :  { %2085 = vmatmul.mubr.msk.f32.vlgmr.msra.gmra.mrb[10].mxu1 %vm840_vm4, %v1320_v37  ;;  %2345 = vmatprep.subr.bf16.mxu1 %v2938_v19  ;;  %v1395_v19 = vsel %vm73_vm0, %v1200_v10, %v1394_v44  ;;  %v2439_v37 = vpack.c.bf16 %v1756_v32, %v1755_v17  ;;  %v1934_v17 = vld [vmem:[#allocation2 + $0x168] sm:$0xff] }
 0x1a2   :  { %2347 = vmatpush1.bf16.msra.mxu1 %v2946_v22  ;;  %1462 = vmatprep.mubr.f32.mxu1 %v2627_v0  ;;  %v1471_v22 = vrot.slane %v3179_v35, 6 }
 0x1a3   :  { %2349 = vmatprep.subr.bf16.mxu1 %v2956_v25  ;;  %v1470_v25 = vrot.slane %v3156_v2, 6 }
 0x1a6   :  { %2351 = vmatpush1.bf16.msra.mxu1 %v2964_v28  ;;  %v1472_v28 = vsel %vm1469_vm9, %v1470_v25, %v1471_v22  ;;  %v1757_v25 = vld [vmem:[#allocation2 + $0xb0] sm:$0xff] }
 0x1a7   :  { %2353 = vmatprep.subr.bf16.mxu1 %v2988_v36  ;;  %v1550_v36 = vrot.slane %v3179_v35, 7 }
 0x1aa   :  { %2355 = vmatpush1.bf16.msra.mxu1 %v2999_v40  ;;  %v1549_v40 = vrot.slane %v3156_v2, 7  ;;  %v2079_v2 = vld [vmem:[%s3514_s1 + $0x411] ss:$8 sm:$0x3]  ;;  %s2630_s1 = smov 16  }
 0x1ab   :  { %2357 = vmatprep.subr.bf16.mxu1 %v3024_v48  ;;  %v1281_v10 = vrot.slane %v2079_v2, %v755_v20  ;;  %v1747_v20 = vld [vmem:[#allocation2 + $0x60] sm:$0xff] }
 0x1ac   :  { %v1551_v48 = vsel %vm1548_vm10, %v1549_v40, %v1550_v36 }
 0x1ae   :  { %2359 = vmatpush1.bf16.msra.mxu1 %v3035_v52 }
 0x1af   :  { %1414 = vmatprep.subr.mxu1 %v3057_v58  ;;  %v1736_v58 = vld [vmem:[#allocation2 + $0x8] sm:$0xff] }
 0x1b2   :  { %1415 = vmatpush1.msra.mxu1 %v3072_v62  ;;  %v2629_v62 = vmov 0.0|0.0  }
 0x1b3   :  { %2086 = vmatmul.mubr.msk.f32.vlgmr.msra.gmra.mrb[10].mxu1 %vm840_vm4, %v1395_v19  ;;  %2361 = vmatprep.subr.bf16.mxu1 %v3074_v63  ;;  %v2409_v63 = vpack.c.bf16 %v1736_v58, %v1735_v55 }
 0x1b4   :  { %2363 = vmatpush1.bf16.msra.mxu1 %v3132_v45  ;;  %1539 = vmatprep.mubr.f32.mxu1 %v2627_v0  ;;  %v2415_v45 = vpack.c.bf16 %v1740_v8, %v1739_v7 }
 0x1b5   :  { %2365 = vmatprep.subr.bf16.mxu1 %v3134_v53  ;;  %2408 = vmatprep.subr.bf16.mxu0 %v2629_v62  ;;  %v1741_v53 = vld [vmem:[#allocation2 + $0x30] sm:$0xff] }
 0x1b6   :  { %2410 = vmatpush1.bf16.msra.mxu0 %v2409_v63 }
 0x1b7   :  { %2411 = vmatprep.subr.bf16.mxu0 %v2629_v62 }
 0x1b8   :  { %2367 = vmatpush1.bf16.msra.mxu1 %v3150_v1  ;;  %v1742_v1 = vld [vmem:[#allocation2 + $0x38] sm:$0xff] }
 0x1b9   :  { %2369 = vmatprep.subr.bf16.mxu1 %v3159_v26  ;;  %v2418_v26 = vpack.c.bf16 %v1742_v1, %v1741_v53 }
 0x1ba   :  { %2413 = vmatpush1.bf16.msra.mxu0 %v2412_v6 }
 0x1bb   :  { %2414 = vmatprep.subr.bf16.mxu0 %v2629_v62 }
 0x1bc   :  { %2371 = vmatpush1.bf16.msra.mxu1 %v3174_v12  ;;  %v1743_v12 = vld [vmem:[#allocation2 + $0x40] sm:$0xff] }
 0x1bd   :  { %2373 = vmatprep.subr.bf16.mxu1 %v3176_v34  ;;  %v1744_v34 = vld [vmem:[#allocation2 + $0x48] sm:$0xff] }
 0x1be   :  { %2416 = vmatpush1.bf16.msra.mxu0 %v2415_v45 }
 0x1bf   :  { %2417 = vmatprep.subr.bf16.mxu0 %v2629_v62 }
 0x1c0   :  { %2375 = vmatpush1.bf16.msra.mxu1 %v3198_v46  ;;  %v1285_v46 = vrot.slane %v2079_v2, %v759_v23 }
 0x1c1   :  { %1491 = vmatprep.subr.mxu1 %v3204_v47 }
 0x1c2   :  { %2419 = vmatpush1.bf16.msra.mxu0 %v2418_v26  ;;  %v1839_v26 = vld [vmem:[#allocation2 + $0xc8] sm:$0xff] }
 0x1c3   :  { %2420 = vmatprep.subr.bf16.mxu0 %v2629_v62 }
 0x1c4   :  { %1492 = vmatpush1.msra.mxu1 %v3229_v16 }
 0x1c5   :  { %2087 = vmatmul.mubr.msk.f32.vlgmr.msra.gmra.mrb[10].mxu1 %vm840_vm4, %v1472_v28  ;;  %2377 = vmatprep.subr.bf16.mxu1 %v3231_v60  ;;  %v2421_v60 = vpack.c.bf16 %v1744_v34, %v1743_v12  ;;  %v1758_v28 = vld [vmem:[#allocation2 + $0xb8] sm:$0xff]  ;;  %v1840_v12 = vld [vmem:[#allocation2 + $0xd0] sm:$0xff] }
 0x1c6   :  { %2379 = vmatpush1.bf16.msra.mxu1 %v3233_v61  ;;  %1618 = vmatprep.mubr.f32.mxu1 %v2627_v0  ;;  %v2442_v36 = vpack.c.bf16 %v1758_v28, %v1757_v25  ;;  %v1938_v25 = vld [vmem:[#allocation2 + $0x188] sm:$0xff] }
 0x1c7   :  { %2381 = vmatprep.subr.bf16.mxu1 %v3235_v24  ;;  %v1745_v24 = vld [vmem:[#allocation2 + $0x50] sm:$0xff]  ;;  %2422 = vmatpush1.bf16.msra.mxu0 %v2421_v60  ;;  %v2445_v60 = vpack.c.bf16 %v1840_v12, %v1839_v26 }
 0x1c8   :  { %2423 = vmatprep.subr.bf16.mxu0 %v2629_v62 }
 0x1ca   :  { %2383 = vmatpush1.bf16.msra.mxu1 %v3253_v51  ;;  %v1746_v51 = vld [vmem:[#allocation2 + $0x58] sm:$0xff] }
 0x1cb   :  { %2385 = vmatprep.subr.bf16.mxu1 %v3257_v29 }
 0x1ce   :  { %2387 = vmatpush1.bf16.msra.mxu1 %v3272_v11 }
 0x1cf   :  { %2389 = vmatprep.subr.bf16.mxu1 %v3275_v13 }
 0x1d2   :  { %2391 = vmatpush1.bf16.msra.mxu1 %v3284_v39  ;;  %v2424_v39 = vpack.c.bf16 %v1746_v51, %v1745_v24  ;;  %v1841_v51 = vld [vmem:[#allocation2 + $0xd8] sm:$0xff] }
 0x1d3   :  { %1570 = vmatprep.subr.mxu1 %v3290_v42 }
 0x1d4   :  { %2425 = vmatpush1.bf16.msra.mxu0 %v2424_v39  ;;  %v1843_v39 = vld [vmem:[#allocation2 + $0xe8] sm:$0xff] }
 0x1d5   :  { %2426 = vmatprep.subr.bf16.mxu0 %v2629_v62 }
 0x1d6   :  { %1571 = vmatpush1.msra.mxu1 %v3315_v4  ;;  %v2427_v4 = vpack.c.bf16 %v1748_v18, %v1747_v20  ;;  %v1845_v18 = vld [vmem:[#allocation2 + $0xf8] sm:$0xff] }
 0x1d7   :  { %2088 = vmatmul.mubr.msk.f32.vlgmr.msra.gmra.mrb[10].mxu1 %vm840_vm4, %v1551_v48  ;;  %2393 = vmatprep.subr.bf16.mxu1 %v3317_v5  ;;  %v1749_v5 = vld [vmem:[#allocation2 + $0x70] sm:$0xff] }
 0x1d8   :  { %2395 = vmatpush1.bf16.msra.mxu1 %v3319_v21  ;;  %1693 = vmatprep.mubr.f32.mxu1 %v2627_v0  ;;  %v1750_v21 = vld [vmem:[#allocation2 + $0x78] sm:$0xff] }
 0x1d9   :  { %2397 = vmatprep.subr.bf16.mxu1 %v3321_v27  ;;  %2428 = vmatpush1.bf16.msra.mxu0 %v2427_v4  ;;  %v2430_v27 = vpack.c.bf16 %v1750_v21, %v1749_v5  ;;  %v1847_v5 = vld [vmem:[#allocation2 + $0x108] sm:$0xff]  ;;  %v1848_v21 = vld [vmem:[#allocation2 + $0x110] sm:$0xff] }
 0x1da   :  { %2429 = vmatprep.subr.bf16.mxu0 %v2629_v62 }
 0x1dc   :  { %2399 = vmatpush1.bf16.msra.mxu1 %v3339_v38  ;;  %v1751_v38 = vld [vmem:[#allocation2 + $0x80] sm:$0xff] }
 0x1dd   :  { %2401 = vmatprep.subr.bf16.mxu1 %v3343_v14  ;;  %v1752_v14 = vld [vmem:[#allocation2 + $0x88] sm:$0xff]  ;;  %2431 = vmatpush1.bf16.msra.mxu0 %v2430_v27  ;;  %v2457_v27 = vpack.c.bf16 %v1848_v21, %v1847_v5 }
 0x1de   :  { %v2433_v50 = vpack.c.bf16 %v1752_v14, %v1751_v38  ;;  %2432 = vmatprep.subr.bf16.mxu0 %v2629_v62  ;;  %v1849_v38 = vld [vmem:[#allocation2 + $0x118] sm:$0xff]  ;;  %v1850_v14 = vld [vmem:[#allocation2 + $0x120] sm:$0xff] }
 0x1e0   :  { %2403 = vmatpush1.bf16.msra.mxu1 %v3358_v57 }
 0x1e1   :  { %2405 = vmatprep.subr.bf16.mxu1 %v3361_v15  ;;  %2434 = vmatpush1.bf16.msra.mxu0 %v2433_v50  ;;  %v2460_v50 = vpack.c.bf16 %v1850_v14, %v1849_v38 }
 0x1e2   :  { %2435 = vmatprep.subr.bf16.mxu0 %v2629_v62 }
 0x1e4   :  { %2407 = vmatpush1.bf16.msra.mxu1 %v3370_v31 }
 0x1e5   :  { %1645 = vmatprep.subr.mxu1 %v3376_v33  ;;  %2437 = vmatpush1.bf16.msra.mxu0 %v2436_v41 }
 0x1e6   :  { %2438 = vmatprep.subr.bf16.mxu0 %v2629_v62 }
 0x1e8   :  { %1646 = vmatpush1.msra.mxu1 %v3383_v9 }
 0x1e9   :  { %2089 = vmatmul.mubr.msk.f32.vlgmr.msra.gmra.mrb[10].mxu1 %vm840_vm4, %v3179_v35  ;;  %2468 = vmatprep.subr.bf16.mxu1 %v2629_v62 }
 0x1ea   :  { %2440 = vmatpush1.bf16.msra.mxu0 %v2439_v37  ;;  %2195 = vmatprep.mubr.msk.f32.mxu1 %vm2633_vm15, %v2627_v0  ;;  %v1935_v37 = vld [vmem:[#allocation2 + $0x170] sm:$0xff] }
 0x1eb   :  { %2441 = vmatprep.subr.bf16.mxu0 %v2629_v62 }
 0x1ee   :  { %2443 = vmatpush1.bf16.msra.mxu0 %v2442_v36  ;;  %v1940_v36 = vld [vmem:[#allocation2 + $0x198] sm:$0xff] }
 0x1ef   :  { %2444 = vmatprep.subr.bf16.mxu0 %v2629_v62 }
 0x233   :  { %v909_v49 = vpop.f32.mrb[12].mxu0 }
 0x234   :  { %v911_v52 = vpop.f32.mrb[13].mxu0 }
 0x262   :  { %v1270_v35 = vpop.f32.mrb[8].mxu1 }
 0x263   :  { %v2504_v47 = vadd.f32 %v1270_v35, %v909_v49  ;;  %v1272_v16 = vpop.f32.mrb[9].mxu1 }
 0x264   :  { %v2505_v61 = vadd.f32 %v1272_v16, %v911_v52 }
 0x265   :  { %v1288_v29 = vadd.f32 %v2504_v47, %v1281_v10 }
 0x266   :  { %v1289_v11 = vadd.f32 %v2505_v61, %v1285_v46 }
 0x267   :  { %v1290_v13 = vmax.f32 %v1288_v29, 0.0  ;;  %v1842_v29 = vld [vmem:[#allocation2 + $0xe0] sm:$0xff] }
 0x268   :  { %v1291_v42 = vmax.f32 %v1289_v11, 0.0 }
 0x26a   :  { %v1292_v23 = vmax.f32 %v1290_v13, %v1291_v42  ;;  %v2448_v13 = vpack.c.bf16 %v1842_v29, %v1841_v51  ;;  %v1844_v42 = vld [vmem:[#allocation2 + $0xf0] sm:$0xff] }
 0x26b   :  { %v2451_v20 = vpack.c.bf16 %v1844_v42, %v1843_v39 }
 0x26c   :  { %v1294_v33 = vrot.slane %v1292_v23, 1 }
 0x26e   :  { %v1296_v19 = vmax.f32 %v1292_v23, %v1294_v33  ;;  %v1846_v23 = vld [vmem:[#allocation2 + $0x100] sm:$0xff] }
 0x26f   :  { %v2454_v4 = vpack.c.bf16 %v1846_v23, %v1845_v18  ;;  %v1933_v33 = vld [vmem:[#allocation2 + $0x160] sm:$0xff] }
 0x270   :  { %v1298_v49 = vrot.slane %v1296_v19, 2  ;;  %v1302_v58 = vrot.slane %v1296_v19, 4  ;;  %v1306_v63 = vrot.slane %v1296_v19, 6  ;;  %v2472_v32 = vpack.c.bf16 %v1934_v17, %v1933_v33 }
 0x2bc   :  { %v1695_v43 = vpop.f32.mrb[10].mxu1 }
 0x2bd   :  { %v1702_v57 = vadd.f32 %v1695_v43, %v1281_v10  ;;  %v1697_v15 = vpop.f32.mrb[11].mxu1  ;;  %v1851_v43 = vld [vmem:[#allocation2 + $0x128] sm:$0xff] }
 0x2be   :  { %v1703_v30 = vadd.f32 %v1697_v15, %v1285_v46  ;;  %v2463_v56 = vpack.c.bf16 %v1852_v54, %v1851_v43  ;;  %v1854_v15 = vld [vmem:[#allocation2 + $0x140] sm:$0xff] }
 0x2bf   :  { %v1704_v31 = vmax.f32 %v1702_v57, 0.0  ;;  %v1853_v57 = vld [vmem:[#allocation2 + $0x138] sm:$0xff] }
 0x2c0   :  { %v1705_v9 = vmax.f32 %v1703_v30, 0.0  ;;  %v2466_v41 = vpack.c.bf16 %v1854_v15, %v1853_v57  ;;  %v1931_v30 = vld [vmem:[#allocation2 + $0x150] sm:$0xff] }
 0x2c2   :  { %v1706_v44 = vmax.f32 %v1704_v31, %v1705_v9  ;;  %v1932_v31 = vld [vmem:[#allocation2 + $0x158] sm:$0xff] }
 0x2c3   :  { %v2469_v9 = vpack.c.bf16 %v1932_v31, %v1931_v30 }
 0x2c4   :  { %v1708_v22 = vrot.slane %v1706_v44, 1 }
 0x2c5   :  { %2470 = vmatpush3.bf16.msra.mxu1 %v2469_v9 }
 0x2c6   :  { %v1710_v40 = vmax.f32 %v1706_v44, %v1708_v22  ;;  %2471 = vmatprep.subr.bf16.mxu1 %v2629_v62  ;;  %v1936_v44 = vld [vmem:[#allocation2 + $0x178] sm:$0xff]  ;;  %v1937_v22 = vld [vmem:[#allocation2 + $0x180] sm:$0xff] }
 0x2c7   :  { %v2478_v28 = vpack.c.bf16 %v1938_v25, %v1937_v22 }
 0x2c8   :  { %v1720_v48 = vrot.slane %v1710_v40, 6  ;;  %v1712_v52 = vrot.slane %v1710_v40, 2  ;;  %v1716_v59 = vrot.slane %v1710_v40, 4 }
 0x2c9   :  { %2473 = vmatpush3.bf16.msra.mxu1 %v2472_v32 }
 0x2ca   :  { %1721 = vrot.lane.b32.xlu1 %v1720_v48, %s2630_s1  ;;  %v2571_v55 = vpack.i.bf16 %v1298_v49, %v1712_v52  ;;  %2474 = vmatprep.subr.bf16.mxu1 %v2629_v62  ;;  %v1941_v48 = vld [vmem:[#allocation2 + $0x1a0] sm:$0xff]  ;;  %v1942_v49 = vld [vmem:[#allocation2 + $0x1a8] sm:$0xff] }
 0x2cb   :  { %v2484_v52 = vpack.c.bf16 %v1942_v49, %v1941_v48 }
 0x2cc   :  { %2572 = vrot.lane.b32.xlu0 %v2571_v55, %s2631_s11  ;;  %v1943_v55 = vld [vmem:[#allocation2 + $0x1b0] sm:$0xff] }
 0x2ce   :  { %1303 = vrot.lane.b32.xlu1 %v1302_v58, %s2632_s12  ;;  %v1944_v58 = vld [vmem:[#allocation2 + $0x1b8] sm:$0xff] }
 0x2d0   :  { %1717 = vrot.lane.b32.xlu0 %v1716_v59, %s2632_s12  ;;  %v2487_v59 = vpack.c.bf16 %v1944_v58, %v1943_v55 }
 0x2d4   :  { %1307 = vrot.lane.b32.xlu0 %v1306_v63, %s2630_s1  ;;  %v2090_v63 = vld [vmem:[#allocation2 + $0xc0] ss:$0 sm:$0xff] }
 0x33c   :  { %v1722_v6 = vpop.permute.xlu1 %1721 }
 0x33e   :  { %v2573_v3 = vpop.permute.xlu0 %2572 }
 0x33f   :  { %v2574_v7 = vunpack.i.l.bf16 %v2573_v3  ;;  %v2575_v8 = vunpack.i.h.bf16 %v2573_v3 }
 0x340   :  { %v1304_v34 = vpop.permute.xlu1 %1303 }
 0x341   :  { %v1724_v45 = vsel %vm1310_vm11, %v1710_v40, %v2574_v7  ;;  %v1311_v10 = vsel %vm1310_vm11, %v1296_v19, %v2575_v8  ;;  %v2475_v19 = vpack.c.bf16 %v1936_v44, %v1935_v37 }
 0x342   :  { %v1718_v53 = vpop.permute.xlu0 %1717  ;;  %v1313_v61 = vsel %vm1312_vm12, %v1311_v10, %v1304_v34 }
 0x343   :  { %v1725_v1 = vsel %vm1312_vm12, %v1724_v45, %v1718_v53  ;;  %v1726_v2 = vsel %vm1314_vm13, %v1718_v53, %v1722_v6  ;;  %2476 = vmatpush3.bf16.msra.mxu1 %v2475_v19  ;;  %v1945_v45 = vld [vmem:[#allocation2 + $0x1c0] sm:$0xff]  ;;  %v1946_v53 = vld [vmem:[#allocation2 + $0x1c8] sm:$0xff] }
 0x344   :  { %v1729_v35 = vrot.slane %v1725_v1, 7  ;;  %v1730_v46 = vrot.slane %v1726_v2, 7  ;;  %2477 = vmatprep.subr.bf16.mxu1 %v2629_v62  ;;  %v2490_v1 = vpack.c.bf16 %v1946_v53, %v1945_v45  ;;  %v2092_v2 = vld [vmem:[#allocation2 + $0x148] ss:$0 sm:$0xff] }
 0x346   :  { %v1308_v47 = vpop.permute.xlu0 %1307  ;;  %v1733_v11 = vsel %vm1548_vm10, %v1313_v61, %v1729_v35  ;;  %v2093_v35 = vld [vmem:[#allocation2 + $0x1d0] ss:$0 sm:$0xff] }
 0x347   :  { %v1315_v16 = vsel %vm1314_vm13, %v1304_v34, %v1308_v47  ;;  %2479 = vmatpush3.bf16.msra.mxu1 %v2478_v28 }
 0x348   :  { %v1734_v24 = vsel %vm1548_vm10, %v1315_v16, %v1730_v46  ;;  %2480 = vmatprep.subr.bf16.mxu1 %v2629_v62 }
 0x349   :  { %2091 = vmatprep.mubr.msk.f32.mxu0 %vm1764_vm14, %v1734_v24 }
 0x34a   :  { %1833 = vmatmul.mubr.f32.vlgmr.msra.gmra.mrb[14].mxu0 %v1733_v11 }
 0x34b   :  { %2446 = vmatpush3.bf16.msra.mxu0 %v2445_v60  ;;  %2160 = vmatprep.mubr.msk.f32.mxu0 %vm2633_vm15, %v2627_v0  ;;  %v1939_v0 = vld [vmem:[#allocation2 + $0x190] sm:$0xff] }
 0x34c   :  { %2447 = vmatprep.subr.bf16.mxu0 %v2629_v62  ;;  %v2481_v40 = vpack.c.bf16 %v1940_v36, %v1939_v0 }
 0x34e   :  { %2482 = vmatpush3.bf16.msra.mxu1 %v2481_v40 }
 0x34f   :  { %2449 = vmatpush3.bf16.msra.mxu0 %v2448_v13  ;;  %2483 = vmatprep.subr.bf16.mxu1 %v2629_v62 }
 0x350   :  { %2450 = vmatprep.subr.bf16.mxu0 %v2629_v62 }
 0x352   :  { %2485 = vmatpush3.bf16.msra.mxu1 %v2484_v52 }
 0x353   :  { %2452 = vmatpush3.bf16.msra.mxu0 %v2451_v20  ;;  %2486 = vmatprep.subr.bf16.mxu1 %v2629_v62 }
 0x354   :  { %2453 = vmatprep.subr.bf16.mxu0 %v2629_v62 }
 0x356   :  { %2488 = vmatpush3.bf16.msra.mxu1 %v2487_v59 }
 0x357   :  { %2455 = vmatpush3.bf16.msra.mxu0 %v2454_v4  ;;  %2489 = vmatprep.subr.bf16.mxu1 %v2629_v62 }
 0x358   :  { %2456 = vmatprep.subr.bf16.mxu0 %v2629_v62 }
 0x35a   :  { %2491 = vmatpush3.bf16.msra.mxu1 %v2490_v1 }
 0x35b   :  { %2458 = vmatpush3.bf16.msra.mxu0 %v2457_v27 }
 0x35c   :  { %2459 = vmatprep.subr.bf16.mxu0 %v2629_v62 }
 0x35f   :  { %2461 = vmatpush3.bf16.msra.mxu0 %v2460_v50 }
 0x360   :  { %2462 = vmatprep.subr.bf16.mxu0 %v2629_v62 }
 0x363   :  { %2464 = vmatpush3.bf16.msra.mxu0 %v2463_v56 }
 0x364   :  { %2465 = vmatprep.subr.bf16.mxu0 %v2629_v62 }
 0x367   :  { %2467 = vmatpush3.bf16.msra.mxu0 %v2466_v41 }
 0x41d   :  { %v1834_v3 = vpop.f32.mrb[14].mxu0 }
 0x41e   :  { %v1835_v6 = vadd.f32 %v2090_v63, %v1834_v3  ;;  %v1836_v7 = vpop.f32.mrb[15].mxu0 }
 0x420   :  { %v1838_v8 = vmax.f32 %v1835_v6, 0.0 }
 0x422   :  { %2161 = vmatmul.mubr.f32.vlgmr.msra.gmra.mrb[16].mxu0 %v1838_v8 }
 0x4f5   :  { %v1926_v26 = vpop.f32.mrb[16].mxu0 }
 0x4f6   :  { %v1927_v12 = vadd.f32 %v2092_v2, %v1926_v26  ;;  %v2162_v34 = vpop.f32.mrb[17].mxu0 }
 0x4f8   :  { %v1930_v10 = vmax.f32 %v1927_v12, 0.0 }
 0x4fa   :  { %2196 = vmatmul.mubr.f32.vlgmr.msra.gmra.mrb[12].mxu1 %v1930_v10 }
 0x5cd   :  { %v2018_v62 = vpop.f32.mrb[12].mxu1 }
 0x5ce   :  { %v2019_v46 = vadd.f32 %v2093_v35, %v2018_v62  ;;  %v2197_v47 = vpop.f32.mrb[13].mxu1 }
 0x5d0   :  { %2022 = vst [vmem:[#allocation5] sm:$0x3] %v2019_v46 }
 0x5d1   :  { %2609 = shalt.err (!%p2606_p12)
}
 0x5d2   :  { %s2610_s18 = scalar_lea.hbm %s3516_s3, 32 }
 0x5d3   :  { %p2611_p13 = scmp.ne.s32.totalorder %s3516_s3, %s2610_s18  ;;  %p2614_p0 = scmp.lt.u32.totalorder %s2610_s18, %s3516_s3 }
 0x5d5   :  { %p2616_p1 = pnand %p2614_p0, %p2611_p13 }
 0x5d7   :  { %2619 = shalt.err (!%p2616_p1)
}
 0x5d8   :  { %2032 = dma.vmem_to_hbm [thread:$0]  %s2030_s14, 32, %s3516_s3, [#allocation4]  }
 0x5d9   :  { %2622 = dma.done.wait [#allocation4], 32  }
 0x5da   :  { %2623 = vsyncadd [#allocation4], 4294967264 }
 0x5db   :  { %2036 = vsyncpa [#allocation3], 1 }
 0x5dc   :  { %2037 = vsyncpa [#allocation4], 1 }

</bundles_post_ra>
